<compile_context>
chip_gen: v6e
topology: v6e:2x2x1
jax: 0.10.0
libtpu: 0.0.40
codegen_flags: <defaults>
</compile_context>

<pallas_src>
import jax
import jax.numpy as jnp
from jax.experimental import pallas as pl
from jax.experimental.pallas import tpu as pltpu

EPSILON = 1e-20   # epsilon used by MaskSoftmax
PAD = 0           # padding index of the target embedding


# -----------------------------------------------------------------------------
# Kernel: one grid step == one decoder timestep; recurrent state (s_t and the
# carried s_t @ [g1_hz|g1_hr] projection) lives in VMEM scratch and is carried
# across grid iterations (grid axis is "arbitrary").
# -----------------------------------------------------------------------------
def decoder_kernel(
    # per-step (blocked over T)
    x1_ref,        # (1, B, 3H)   precomputed GRU1 input terms  [z|r|h] (+ biases)
    yly_ref,       # (1, B, 2O)   precomputed readout y-term    [a|b] (+ biases)
    ym_ref,        # (1, B, 1)    ys_mask[k]
    # constants
    uh_ref,        # (B, L, A)
    xs_h_ref,      # (B, L, C)
    xsm_ref,       # (B, L)
    s0_ref,        # (B, H)
    hzr10_ref,     # (B, 2H)      s0 @ [g1_hz|g1_hr] (precomputed)
    w1_hh,         # (H, H)
    wsa_w2hzr,     # (H, A+2H)    [wsa | g2_hz | g2_hr]
    bsa,           # (1, A)
    wa1, ba1,      # (1, A), (1, 1)
    w2x_lc,        # (C, 3H+2O)   [g2_xz|g2_xr|g2_xh | lc_a|lc_b]
    b2,            # (1, 3H)
    w2_hh,         # (H, H)
    w1hzr_ls,      # (H, 2H+2O)   [g1_hz|g1_hr | ls_a|ls_b]
    # output + scratch
    logit_ref,     # (1, B, O)
    s_scr,         # (B, H)  VMEM
    hzr1_scr,      # (B, 2H) VMEM  (carried s_tm1 @ [g1_hz|g1_hr])
):
    k = pl.program_id(0)
    sig = jax.nn.sigmoid
    H = s_scr.shape[1]
    A = bsa.shape[1]
    O = logit_ref.shape[2]

    @pl.when(k == 0)
    def _():
        s_scr[...] = s0_ref[...]
        hzr1_scr[...] = hzr10_ref[...]

    def mm(a, w):
        return jnp.dot(a, w, preferred_element_type=jnp.float32)

    x1 = x1_ref[0]           # (B, 3H)
    ym = ym_ref[0]           # (B, 1)
    s_tm1 = s_scr[...]       # (B, H)
    hzr1 = hzr1_scr[...]     # (B, 2H)   == s_tm1 @ [g1_hz|g1_hr]

    # --- GRU1 (conditional GRU; input-side & hidden-gate terms precomputed) ---
    z1 = sig(x1[:, 0:H] + hzr1[:, 0:H])
    r1 = sig(x1[:, H:2 * H] + hzr1[:, H:2 * H])
    h1 = jnp.tanh(x1[:, 2 * H:3 * H] + mm(r1 * s_tm1, w1_hh[...]))
    s_above = s_tm1 + z1 * (h1 - s_tm1)                        # (1-z)*s + z*h
    s_above = s_tm1 + ym * (s_above - s_tm1)                   # mask gate

    # --- fused s_above projections: attention sa-term + GRU2 hidden gates ---
    sa_hzr2 = mm(s_above, wsa_w2hzr[...])                      # (B, A+2H)
    sa = sa_hzr2[:, 0:A] + bsa[...]                            # (B, A)
    hzr2 = sa_hzr2[:, A:A + 2 * H]                             # (B, 2H)

    # --- additive attention, masked softmax over source axis (lane axis) ---
    t = jnp.tanh(sa[:, None, :] + uh_ref[...])                 # (B, L, A)
    e = jnp.sum(t * wa1[...][None, :, :], axis=-1) + ba1[...]  # (B, L)
    e_max = jnp.max(e, axis=-1, keepdims=True)                 # (B, 1)
    e_exp = jnp.exp(e - e_max) * xsm_ref[...]                  # (B, L)
    denom = jnp.sum(e_exp, axis=-1, keepdims=True) + EPSILON   # (B, 1)
    alpha = e_exp * pl.reciprocal(denom, approx=True)          # (B, L)
    attend = jnp.einsum(
        'bql,blc->bqc', alpha[:, None, :], xs_h_ref[...],
        preferred_element_type=jnp.float32)[:, 0, :]           # (B, C)

    # --- fused attend projections: GRU2 input-side + readout c-term ---
    x2_lc = mm(attend, w2x_lc[...])                            # (B, 3H+2O)
    x2 = x2_lc[:, 0:3 * H] + b2[...]                           # (B, 3H)
    lc_ab = x2_lc[:, 3 * H:3 * H + 2 * O]                      # (B, 2O)

    # --- GRU2 ---
    z2 = sig(x2[:, 0:H] + hzr2[:, 0:H])
    r2 = sig(x2[:, H:2 * H] + hzr2[:, H:2 * H])
    h2 = jnp.tanh(x2[:, 2 * H:3 * H] + mm(r2 * s_above, w2_hh[...]))
    s_t = s_above + z2 * (h2 - s_above)
    s_t = s_above + ym * (s_t - s_above)
    s_scr[...] = s_t

    # --- fused s_t projections: next-step GRU1 hidden gates + readout s-term ---
    hzr1_ls = mm(s_t, w1hzr_ls[...])                           # (B, 2H+2O)
    hzr1_scr[...] = hzr1_ls[:, 0:2 * H]
    lab = hzr1_ls[:, 2 * H:2 * H + 2 * O] + lc_ab + yly_ref[0]  # (B, 2O) = [la | lb]
    logit_ref[0] = jnp.maximum(lab[:, 0:O], lab[:, O:2 * O]) * ym


# -----------------------------------------------------------------------------
# Wrapper: hoisted batched precompute + pallas_call.
# -----------------------------------------------------------------------------
def _nbytes(shape, dtype=jnp.float32):
    n = 1
    for d in shape:
        n *= int(d)
    return n * jnp.dtype(dtype).itemsize


def decoder_forward_pallas(params, s0, xs_h, ys_ids, uh, xs_mask, ys_mask):
    p = params
    T, B = ys_ids.shape
    L, _, C = xs_h.shape
    A = uh.shape[2]
    H = s0.shape[1]
    O = p["b_a"].shape[1]
    f32 = jnp.float32

    xs_mask = xs_mask.astype(f32)
    ys_mask = ys_mask.astype(f32)
    s0 = s0.astype(f32)

    # ---- hoisted, non-recurrent per-timestep math (batched over all T steps) ----
    with jax.default_matmul_precision("highest"):
        ys_e = jnp.take(p["emb"], ys_ids, axis=0)                       # (T, B, E)
        y_hypo = ys_e[0]                                                # (B, E)  (ss_eps == 1.0)
        g = jax.nn.sigmoid(ys_e @ p["wg"] + p["bg"]
                           + (y_hypo @ p["wh"] + p["bh"])[None])
        y_mix = g * ys_e + (1.0 - g) * y_hypo[None]                     # (T, B, E)

        w1_x = jnp.concatenate([p["g1_xz"], p["g1_xr"], p["g1_xh"]], axis=1)  # (E, 3H)
        w1_c = jnp.concatenate([p["g1_cz"], p["g1_cr"], p["g1_ch"]], axis=1)  # (E, 3H)
        b1 = jnp.concatenate([p["g1_bz"], p["g1_br"], p["g1_bh"]], axis=1)    # (1, 3H)
        x1 = y_mix @ w1_x + (y_hypo @ w1_c + b1)[None]                  # (T, B, 3H)

        ly_ab = jnp.concatenate([p["ly_a"], p["ly_b"]], axis=1)         # (E, 2O)
        b_ab = jnp.concatenate([p["b_a"], p["b_b"]], axis=1)            # (1, 2O)
        y_ly = y_mix @ ly_ab + b_ab[None]                               # (T, B, 2O)

        w1_hzr = jnp.concatenate([p["g1_hz"], p["g1_hr"]], axis=1)      # (H, 2H)
        hzr1_0 = s0 @ w1_hzr                                            # (B, 2H)

    ym3 = ys_mask[:, :, None]                                           # (T, B, 1)

    # ---- fused recurrent weights (one-time concat) ----
    wsa_w2hzr = jnp.concatenate([p["wsa"], p["g2_hz"], p["g2_hr"]], axis=1)   # (H, A+2H)
    w2_x = jnp.concatenate([p["g2_xz"], p["g2_xr"], p["g2_xh"]], axis=1)      # (C, 3H)
    lc_ab = jnp.concatenate([p["lc_a"], p["lc_b"]], axis=1)                   # (C, 2O)
    w2x_lc = jnp.concatenate([w2_x, lc_ab], axis=1)                           # (C, 3H+2O)
    b2 = jnp.concatenate([p["g2_bz"], p["g2_br"], p["g2_bh"]], axis=1)        # (1, 3H)
    ls_ab = jnp.concatenate([p["ls_a"], p["ls_b"]], axis=1)                   # (H, 2O)
    w1hzr_ls = jnp.concatenate([w1_hzr, ls_ab], axis=1)                       # (H, 2H+2O)

    # ---- lane-dense attention layout: source length on the lane axis ----
    uh_t = jnp.transpose(uh, (1, 0, 2)).astype(f32)                     # (B, L, A)
    xs_h_t = jnp.transpose(xs_h, (1, 0, 2)).astype(f32)                 # (B, L, C)
    xsm_t = jnp.transpose(xs_mask, (1, 0))                              # (B, L)

    step_inputs = [x1, y_ly, ym3]
    const_inputs = [uh_t, xs_h_t, xsm_t, s0, hzr1_0,
                    p["g1_hh"],
                    wsa_w2hzr, p["bsa"], p["wa1"], p["ba1"],
                    w2x_lc, b2, p["g2_hh"],
                    w1hzr_ls]

    def step_spec(a):
        nd = a.ndim
        return pl.BlockSpec((1,) + a.shape[1:],
                            lambda k, _nd=nd: (k,) + (0,) * (_nd - 1))

    def const_spec(a):
        nd = a.ndim
        return pl.BlockSpec(a.shape, lambda k, _nd=nd: (0,) * _nd)

    # VMEM budget from the actual resident blocks (double-buffered) + headroom.
    vmem = 0
    for a in step_inputs:
        vmem += 2 * _nbytes((1,) + a.shape[1:], a.dtype)
    for a in const_inputs:
        vmem += 2 * _nbytes(a.shape, a.dtype)
    vmem += 2 * _nbytes((1, B, O)) + _nbytes((B, H)) + _nbytes((B, 2 * H))
    vmem_limit = min(max(int(vmem) + (8 << 20), 16 << 20), 100 << 20)

    grid_spec = pltpu.PrefetchScalarGridSpec(
        num_scalar_prefetch=0,
        grid=(T,),
        in_specs=[step_spec(a) for a in step_inputs]
                 + [const_spec(a) for a in const_inputs],
        out_specs=pl.BlockSpec((1, B, O), lambda k: (k, 0, 0)),
        scratch_shapes=[pltpu.VMEM((B, H), jnp.float32),
                        pltpu.VMEM((B, 2 * H), jnp.float32)],
    )
    return pl.pallas_call(
        decoder_kernel,
        out_shape=jax.ShapeDtypeStruct((T, B, O), jnp.float32),
        grid_spec=grid_spec,
        compiler_params=pltpu.CompilerParams(
            dimension_semantics=("arbitrary",),   # recurrence: never "parallel"
            vmem_limit_bytes=vmem_limit,
        ),
    )(*(step_inputs + const_inputs))


# -----------------------------------------------------------------------------
# Pure-JAX reference with the original (unfused) math, for verification.
# -----------------------------------------------------------------------------
def decoder_forward_ref(params, s0, xs_h, ys_ids, uh, xs_mask, ys_mask):
    p = params
    sig = jax.nn.sigmoid
    xs_mask = xs_mask.astype(jnp.float32)
    ys_e = jnp.take(p["emb"], ys_ids, axis=0)
    y_hypo = ys_e[0]
    s = s0
    T = ys_ids.shape[0]
    logits = []
    for k in range(T):
        y_k = ys_e[k]
        ym = ys_mask[k][:, None]
        g = sig(y_k @ p["wg"] + p["bg"] + y_hypo @ p["wh"] + p["bh"])
        y = g * y_k + (1.0 - g) * y_hypo
        z1 = sig(y @ p["g1_xz"] + s @ p["g1_hz"] + y_hypo @ p["g1_cz"] + p["g1_bz"])
        r1 = sig(y @ p["g1_xr"] + s @ p["g1_hr"] + y_hypo @ p["g1_cr"] + p["g1_br"])
        h1 = jnp.tanh(y @ p["g1_xh"] + (r1 * s) @ p["g1_hh"] + y_hypo @ p["g1_ch"] + p["g1_bh"])
        s_above = (1.0 - z1) * s + z1 * h1
        s_above = ym * s_above + (1.0 - ym) * s
        sa = s_above @ p["wsa"] + p["bsa"]
        t = jnp.tanh(sa[None] + uh)
        e = jnp.sum(t * p["wa1"][None], axis=-1) + p["ba1"]
        e_max = jnp.max(e, axis=0, keepdims=True)
        e_exp = jnp.exp(e - e_max) * xs_mask
        alpha = e_exp / (jnp.sum(e_exp, axis=0, keepdims=True) + EPSILON)
        attend = jnp.sum(alpha[:, :, None] * xs_h, axis=0)
        z2 = sig(attend @ p["g2_xz"] + s_above @ p["g2_hz"] + p["g2_bz"])
        r2 = sig(attend @ p["g2_xr"] + s_above @ p["g2_hr"] + p["g2_br"])
        h2 = jnp.tanh(attend @ p["g2_xh"] + (r2 * s_above) @ p["g2_hh"] + p["g2_bh"])
        s_t = (1.0 - z2) * s_above + z2 * h2
        s_t = ym * s_t + (1.0 - ym) * s_above
        la = s_t @ p["ls_a"] + y @ p["ly_a"] + attend @ p["lc_a"] + p["b_a"]
        lb = s_t @ p["ls_b"] + y @ p["ly_b"] + attend @ p["lc_b"] + p["b_b"]
        logits.append(jnp.maximum(la, lb) * ym)
        s = s_t
    return jnp.stack(logits, axis=0)


def init_params(key, V, E, H, C, A, O):
    keys = iter(jax.random.split(key, 64))

    def w(shape, scale=0.08):
        return scale * jax.random.normal(next(keys), shape, dtype=jnp.float32)

    p = {}
    emb = w((V, E), 0.1)
    p["emb"] = emb.at[PAD].set(0.0)                  # nn.Embedding(padding_idx=PAD)
    p["wg"], p["bg"] = w((E, E)), w((1, E))          # w_gold   (stored as (in, out))
    p["wh"], p["bh"] = w((E, E)), w((1, E))          # w_hypo
    for gate in ("z", "r", "h"):                     # GRU1: in=E, hid=H, enc=E
        p[f"g1_x{gate}"] = w((E, H))
        p[f"g1_h{gate}"] = w((H, H))
        p[f"g1_c{gate}"] = w((E, H))
        p[f"g1_b{gate}"] = w((1, H))
    p["wsa"], p["bsa"] = w((H, A)), w((1, A))        # attention.sa
    p["wa1"], p["ba1"] = w((1, A)), w((1, 1))        # attention.a1 (weight is (1, A))
    for gate in ("z", "r", "h"):                     # GRU2: in=C, hid=H
        p[f"g2_x{gate}"] = w((C, H))
        p[f"g2_h{gate}"] = w((H, H))
        p[f"g2_b{gate}"] = w((1, H))
    ls, ly, lc = w((H, 2 * O)), w((E, 2 * O)), w((C, 2 * O))
    b = w((1, 2 * O)) + w((1, 2 * O)) + w((1, 2 * O))
    # maxout pairing (., 2k) vs (., 2k+1) -> split into even/odd column halves
    p["ls_a"], p["ls_b"] = ls[:, 0::2], ls[:, 1::2]
    p["ly_a"], p["ly_b"] = ly[:, 0::2], ly[:, 1::2]
    p["lc_a"], p["lc_b"] = lc[:, 0::2], lc[:, 1::2]
    p["b_a"], p["b_b"] = b[:, 0::2], b[:, 1::2]
    return p


if __name__ == "__main__":
    # wargs: trg_wemb_size=E, dec_hid_size=H, enc_hid_size=C, align_size=A, out_size=O
    V, E, H, C, A, O = 16, 32, 32, 32, 32, 32
    T, B, L = 6, 8, 8

    key = jax.random.PRNGKey(0)
    k_par, k_s0, k_xs, k_uh, k_ys = jax.random.split(key, 5)
    params = init_params(k_par, V, E, H, C, A, O)

    s0 = 0.1 * jax.random.normal(k_s0, (B, H), jnp.float32)
    xs_h = jax.random.normal(k_xs, (L, B, C), jnp.float32)
    uh = jax.random.normal(k_uh, (L, B, A), jnp.float32)   # precomputed attention proj (input)
    ys_ids = jax.random.randint(k_ys, (T, B), 0, V)
    xs_len = jnp.array([8, 7, 6, 5, 8, 3, 8, 4], dtype=jnp.int32)
    xs_mask = (jnp.arange(L)[:, None] < xs_len[None, :]).astype(jnp.float32)   # (L, B)
    ys_len = jnp.array([6, 6, 5, 4, 6, 3, 2, 6], dtype=jnp.int32)
    ys_mask = (jnp.arange(T)[:, None] < ys_len[None, :]).astype(jnp.float32)   # (T, B)

    out = jax.block_until_ready(
        decoder_forward_pallas(params, s0, xs_h, ys_ids, uh, xs_mask, ys_mask)
    )
    with jax.default_matmul_precision("highest"):
        ref = jax.block_until_ready(
            decoder_forward_ref(params, s0, xs_h, ys_ids, uh, xs_mask, ys_mask)
        )

    assert out.shape == (T, B, O), out.shape
    if not jnp.allclose(out, ref, atol=5e-3, rtol=5e-3):
        raise SystemExit(f"mismatch: max abs err {float(jnp.max(jnp.abs(out - ref)))}")
    print("KERNEL_OK")
</pallas_src>

<mosaic_0001>
module attributes {stable_mosaic.version = 11 : i64} {
  func.func @decoder_kernel(%arg0: i32, %arg1: memref<1x8x96xf32, #tpu.memory_space<vmem>>, %arg2: memref<1x8x64xf32, #tpu.memory_space<vmem>>, %arg3: memref<1x8x1xf32, #tpu.memory_space<vmem>>, %arg4: memref<8x8x32xf32, #tpu.memory_space<vmem>>, %arg5: memref<8x8x32xf32, #tpu.memory_space<vmem>>, %arg6: memref<8x8xf32, #tpu.memory_space<vmem>>, %arg7: memref<8x32xf32, #tpu.memory_space<vmem>>, %arg8: memref<8x64xf32, #tpu.memory_space<vmem>>, %arg9: memref<32x32xf32, #tpu.memory_space<vmem>>, %arg10: memref<32x96xf32, #tpu.memory_space<vmem>>, %arg11: memref<1x32xf32, #tpu.memory_space<vmem>>, %arg12: memref<1x32xf32, #tpu.memory_space<vmem>>, %arg13: memref<1x1xf32, #tpu.memory_space<vmem>>, %arg14: memref<32x160xf32, #tpu.memory_space<vmem>>, %arg15: memref<1x96xf32, #tpu.memory_space<vmem>>, %arg16: memref<32x32xf32, #tpu.memory_space<vmem>>, %arg17: memref<32x128xf32, #tpu.memory_space<vmem>>, %arg18: memref<1x8x32xf32, #tpu.memory_space<vmem>>, %arg19: memref<8x32xf32, #tpu.memory_space<vmem>>, %arg20: memref<8x64xf32, #tpu.memory_space<vmem>>) attributes {dimension_semantics = [#tpu.dimension_semantics<arbitrary>], iteration_bounds = array<i64: 6>, scalar_prefetch = 0 : i64, scratch_operands = 2 : i64, tpu.core_type = #tpu.core_type<tc>, window_params = [{transform_indices = @transform_0, window_bounds = array<i64: 1, 8, 96>}, {transform_indices = @transform_1, window_bounds = array<i64: 1, 8, 64>}, {transform_indices = @transform_2, window_bounds = array<i64: 1, 8, 1>}, {pipeline_mode = #tpu.pipeline_mode<synchronous>, transform_indices = @transform_3, window_bounds = array<i64: 8, 8, 32>}, {pipeline_mode = #tpu.pipeline_mode<synchronous>, transform_indices = @transform_4, window_bounds = array<i64: 8, 8, 32>}, {pipeline_mode = #tpu.pipeline_mode<synchronous>, transform_indices = @transform_5, window_bounds = array<i64: 8, 8>}, {pipeline_mode = #tpu.pipeline_mode<synchronous>, transform_indices = @transform_6, window_bounds = array<i64: 8, 32>}, {pipeline_mode = #tpu.pipeline_mode<synchronous>, transform_indices = @transform_7, window_bounds = array<i64: 8, 64>}, {pipeline_mode = #tpu.pipeline_mode<synchronous>, transform_indices = @transform_8, window_bounds = array<i64: 32, 32>}, {pipeline_mode = #tpu.pipeline_mode<synchronous>, transform_indices = @transform_9, window_bounds = array<i64: 32, 96>}, {pipeline_mode = #tpu.pipeline_mode<synchronous>, transform_indices = @transform_10, window_bounds = array<i64: 1, 32>}, {pipeline_mode = #tpu.pipeline_mode<synchronous>, transform_indices = @transform_11, window_bounds = array<i64: 1, 32>}, {pipeline_mode = #tpu.pipeline_mode<synchronous>, transform_indices = @transform_12, window_bounds = array<i64: 1, 1>}, {pipeline_mode = #tpu.pipeline_mode<synchronous>, transform_indices = @transform_13, window_bounds = array<i64: 32, 160>}, {pipeline_mode = #tpu.pipeline_mode<synchronous>, transform_indices = @transform_14, window_bounds = array<i64: 1, 96>}, {pipeline_mode = #tpu.pipeline_mode<synchronous>, transform_indices = @transform_15, window_bounds = array<i64: 32, 32>}, {pipeline_mode = #tpu.pipeline_mode<synchronous>, transform_indices = @transform_16, window_bounds = array<i64: 32, 128>}, {transform_indices = @transform_17, window_bounds = array<i64: 1, 8, 32>}]} {
    %c0_i32 = arith.constant 0 : i32
    %0 = arith.cmpi eq, %arg0, %c0_i32 : i32
    %1 = arith.extui %0 : i1 to i32
    %c0_i32_0 = arith.constant 0 : i32
    %2 = arith.cmpi ne, %1, %c0_i32_0 : i32
    scf.if %2 {
      %c0_59 = arith.constant 0 : index
      %c0_60 = arith.constant 0 : index
      %130 = vector.load %arg7[%c0_59, %c0_60] : memref<8x32xf32, #tpu.memory_space<vmem>>, vector<8x32xf32>
      %c0_61 = arith.constant 0 : index
      %c0_62 = arith.constant 0 : index
      %131 = vector.load %arg19[%c0_61, %c0_62] : memref<8x32xf32, #tpu.memory_space<vmem>>, vector<8x32xf32>
      tpu.vector_store %arg19[%c0_61, %c0_62], %130 {strides = array<i32>} : memref<8x32xf32, #tpu.memory_space<vmem>>, vector<8x32xf32>,
      %c0_63 = arith.constant 0 : index
      %c0_64 = arith.constant 0 : index
      %132 = vector.load %arg8[%c0_63, %c0_64] : memref<8x64xf32, #tpu.memory_space<vmem>>, vector<8x64xf32>
      %c0_65 = arith.constant 0 : index
      %c0_66 = arith.constant 0 : index
      %133 = vector.load %arg20[%c0_65, %c0_66] : memref<8x64xf32, #tpu.memory_space<vmem>>, vector<8x64xf32>
      tpu.vector_store %arg20[%c0_65, %c0_66], %132 {strides = array<i32>} : memref<8x64xf32, #tpu.memory_space<vmem>>, vector<8x64xf32>,
    } else {
    }
    %c0 = arith.constant 0 : index
    %c0_1 = arith.constant 0 : index
    %c0_2 = arith.constant 0 : index
    %3 = vector.load %arg1[%c0, %c0_1, %c0_2] : memref<1x8x96xf32, #tpu.memory_space<vmem>>, vector<1x8x96xf32>
    %4 = vector.shape_cast %3 : vector<1x8x96xf32> to vector<8x96xf32>
    %c0_3 = arith.constant 0 : index
    %c0_4 = arith.constant 0 : index
    %c0_5 = arith.constant 0 : index
    %5 = vector.load %arg3[%c0_3, %c0_4, %c0_5] : memref<1x8x1xf32, #tpu.memory_space<vmem>>, vector<1x8x1xf32>
    %6 = vector.shape_cast %5 : vector<1x8x1xf32> to vector<8x1xf32>
    %c0_6 = arith.constant 0 : index
    %c0_7 = arith.constant 0 : index
    %7 = vector.load %arg19[%c0_6, %c0_7] : memref<8x32xf32, #tpu.memory_space<vmem>>, vector<8x32xf32>
    %c0_8 = arith.constant 0 : index
    %c0_9 = arith.constant 0 : index
    %8 = vector.load %arg20[%c0_8, %c0_9] : memref<8x64xf32, #tpu.memory_space<vmem>>, vector<8x64xf32>
    %9 = vector.extract_strided_slice %4 {offsets = [0, 0], sizes = [8, 32], strides = [1, 1]} : vector<8x96xf32> to vector<8x32xf32>
    %10 = vector.extract_strided_slice %8 {offsets = [0, 0], sizes = [8, 32], strides = [1, 1]} : vector<8x64xf32> to vector<8x32xf32>
    %11 = arith.addf %9, %10 : vector<8x32xf32>
    %12 = arith.negf %11 : vector<8x32xf32>
    %13 = math.exp %12 : vector<8x32xf32>
    %cst = arith.constant 1.000000e+00 : f32
    %14 = vector.broadcast %cst : f32 to vector<8x32xf32>
    %15 = arith.addf %14, %13 : vector<8x32xf32>
    %16 = arith.divf %14, %15 : vector<8x32xf32>
    %17 = vector.extract_strided_slice %4 {offsets = [0, 32], sizes = [8, 32], strides = [1, 1]} : vector<8x96xf32> to vector<8x32xf32>
    %18 = vector.extract_strided_slice %8 {offsets = [0, 32], sizes = [8, 32], strides = [1, 1]} : vector<8x64xf32> to vector<8x32xf32>
    %19 = arith.addf %17, %18 : vector<8x32xf32>
    %20 = arith.negf %19 : vector<8x32xf32>
    %21 = math.exp %20 : vector<8x32xf32>
    %cst_10 = arith.constant 1.000000e+00 : f32
    %22 = vector.broadcast %cst_10 : f32 to vector<8x32xf32>
    %23 = arith.addf %22, %21 : vector<8x32xf32>
    %24 = arith.divf %22, %23 : vector<8x32xf32>
    %25 = vector.extract_strided_slice %4 {offsets = [0, 64], sizes = [8, 32], strides = [1, 1]} : vector<8x96xf32> to vector<8x32xf32>
    %26 = arith.mulf %24, %7 : vector<8x32xf32>
    %c0_11 = arith.constant 0 : index
    %c0_12 = arith.constant 0 : index
    %27 = vector.load %arg9[%c0_11, %c0_12] : memref<32x32xf32, #tpu.memory_space<vmem>>, vector<32x32xf32>
    %cst_13 = arith.constant dense<0.000000e+00> : vector<8x32xf32>
    %28 = tpu.matmul %26, %27, %cst_13 {dimension_numbers = #tpu.dot_dimension_numbers<[1], [0], [0], [1], [0, 0, 1, 1], [], []>} : vector<8x32xf32>, vector<32x32xf32>, vector<8x32xf32> -> vector<8x32xf32>
    %29 = arith.addf %25, %28 : vector<8x32xf32>
    %30 = math.tanh %29 : vector<8x32xf32>
    %31 = arith.subf %30, %7 : vector<8x32xf32>
    %32 = arith.mulf %16, %31 : vector<8x32xf32>
    %33 = arith.addf %7, %32 : vector<8x32xf32>
    %34 = arith.subf %33, %7 : vector<8x32xf32>
    %35 = vector.broadcast %6 : vector<8x1xf32> to vector<8x32xf32>
    %36 = arith.mulf %35, %34 : vector<8x32xf32>
    %37 = arith.addf %7, %36 : vector<8x32xf32>
    %c0_14 = arith.constant 0 : index
    %c0_15 = arith.constant 0 : index
    %38 = vector.load %arg10[%c0_14, %c0_15] : memref<32x96xf32, #tpu.memory_space<vmem>>, vector<32x96xf32>
    %cst_16 = arith.constant dense<0.000000e+00> : vector<8x96xf32>
    %39 = tpu.matmul %37, %38, %cst_16 {dimension_numbers = #tpu.dot_dimension_numbers<[1], [0], [0], [1], [0, 0, 1, 1], [], []>} : vector<8x32xf32>, vector<32x96xf32>, vector<8x96xf32> -> vector<8x96xf32>
    %40 = vector.extract_strided_slice %39 {offsets = [0, 0], sizes = [8, 32], strides = [1, 1]} : vector<8x96xf32> to vector<8x32xf32>
    %c0_17 = arith.constant 0 : index
    %c0_18 = arith.constant 0 : index
    %41 = vector.load %arg11[%c0_17, %c0_18] : memref<1x32xf32, #tpu.memory_space<vmem>>, vector<1x32xf32>
    %42 = vector.broadcast %41 : vector<1x32xf32> to vector<8x32xf32>
    %43 = arith.addf %40, %42 : vector<8x32xf32>
    %44 = vector.extract_strided_slice %39 {offsets = [0, 32], sizes = [8, 64], strides = [1, 1]} : vector<8x96xf32> to vector<8x64xf32>
    %45 = vector.shape_cast %43 : vector<8x32xf32> to vector<8x1x32xf32>
    %c0_19 = arith.constant 0 : index
    %c0_20 = arith.constant 0 : index
    %c0_21 = arith.constant 0 : index
    %46 = vector.load %arg4[%c0_19, %c0_20, %c0_21] : memref<8x8x32xf32, #tpu.memory_space<vmem>>, vector<8x8x32xf32>
    %47 = vector.broadcast %45 : vector<8x1x32xf32> to vector<8x8x32xf32>
    %48 = arith.addf %47, %46 : vector<8x8x32xf32>
    %49 = math.tanh %48 : vector<8x8x32xf32>
    %c0_22 = arith.constant 0 : index
    %c0_23 = arith.constant 0 : index
    %50 = vector.load %arg12[%c0_22, %c0_23] : memref<1x32xf32, #tpu.memory_space<vmem>>, vector<1x32xf32>
    %51 = vector.shape_cast %50 : vector<1x32xf32> to vector<1x1x32xf32>
    %52 = vector.broadcast %51 : vector<1x1x32xf32> to vector<8x8x32xf32>
    %53 = arith.mulf %49, %52 : vector<8x8x32xf32>
    %cst_24 = arith.constant dense<0.000000e+00> : vector<8x8xf32>
    %54 = vector.multi_reduction <add>, %53, %cst_24 [2] : vector<8x8x32xf32> to vector<8x8xf32>
    %c0_25 = arith.constant 0 : index
    %c0_26 = arith.constant 0 : index
    %55 = vector.load %arg13[%c0_25, %c0_26] : memref<1x1xf32, #tpu.memory_space<vmem>>, vector<1x1xf32>
    %56 = vector.broadcast %55 : vector<1x1xf32> to vector<8x8xf32>
    %57 = arith.addf %54, %56 : vector<8x8xf32>
    %cst_27 = arith.constant dense<0xFF800000> : vector<8xf32>
    %58 = vector.multi_reduction <maximumf>, %57, %cst_27 [1] : vector<8x8xf32> to vector<8xf32>
    %59 = vector.shape_cast %58 : vector<8xf32> to vector<8x1xf32>
    %60 = vector.broadcast %59 : vector<8x1xf32> to vector<8x8xf32>
    %61 = arith.subf %57, %60 : vector<8x8xf32>
    %62 = math.exp %61 : vector<8x8xf32>
    %c0_28 = arith.constant 0 : index
    %c0_29 = arith.constant 0 : index
    %63 = vector.load %arg6[%c0_28, %c0_29] : memref<8x8xf32, #tpu.memory_space<vmem>>, vector<8x8xf32>
    %64 = arith.mulf %62, %63 : vector<8x8xf32>
    %cst_30 = arith.constant dense<0.000000e+00> : vector<8xf32>
    %65 = vector.multi_reduction <add>, %64, %cst_30 [1] : vector<8x8xf32> to vector<8xf32>
    %66 = vector.shape_cast %65 : vector<8xf32> to vector<8x1xf32>
    %cst_31 = arith.constant 9.99999968E-21 : f32
    %67 = vector.broadcast %cst_31 : f32 to vector<8x1xf32>
    %68 = arith.addf %66, %67 : vector<8x1xf32>
    %69 = tpu.reciprocal %68 {approx = true} : vector<8x1xf32> -> vector<8x1xf32>
    %70 = vector.broadcast %69 : vector<8x1xf32> to vector<8x8xf32>
    %71 = arith.mulf %64, %70 : vector<8x8xf32>
    %72 = vector.shape_cast %71 : vector<8x8xf32> to vector<8x1x8xf32>
    %c0_32 = arith.constant 0 : index
    %c0_33 = arith.constant 0 : index
    %c0_34 = arith.constant 0 : index
    %73 = vector.load %arg5[%c0_32, %c0_33, %c0_34] : memref<8x8x32xf32, #tpu.memory_space<vmem>>, vector<8x8x32xf32>
    "tpu.trace_start"() <{level = 10 : i32, message = "bql,blc->bqc"}> : () -> ()
    %cst_35 = arith.constant dense<0.000000e+00> : vector<8x1x32xf32>
    %74 = tpu.matmul %72, %73, %cst_35 {dimension_numbers = #tpu.dot_dimension_numbers<[2], [1], [1], [2], [0, 0, 0, 1, 1, 2], [0], [0]>} : vector<8x1x8xf32>, vector<8x8x32xf32>, vector<8x1x32xf32> -> vector<8x1x32xf32>
    "tpu.trace_stop"() : () -> ()
    %75 = vector.shape_cast %74 : vector<8x1x32xf32> to vector<8x32xf32>
    %c0_36 = arith.constant 0 : index
    %c0_37 = arith.constant 0 : index
    %76 = vector.load %arg14[%c0_36, %c0_37] : memref<32x160xf32, #tpu.memory_space<vmem>>, vector<32x160xf32>
    %cst_38 = arith.constant dense<0.000000e+00> : vector<8x160xf32>
    %77 = tpu.matmul %75, %76, %cst_38 {dimension_numbers = #tpu.dot_dimension_numbers<[1], [0], [0], [1], [0, 0, 1, 1], [], []>} : vector<8x32xf32>, vector<32x160xf32>, vector<8x160xf32> -> vector<8x160xf32>
    %78 = vector.extract_strided_slice %77 {offsets = [0, 0], sizes = [8, 96], strides = [1, 1]} : vector<8x160xf32> to vector<8x96xf32>
    %c0_39 = arith.constant 0 : index
    %c0_40 = arith.constant 0 : index
    %79 = vector.load %arg15[%c0_39, %c0_40] : memref<1x96xf32, #tpu.memory_space<vmem>>, vector<1x96xf32>
    %80 = vector.broadcast %79 : vector<1x96xf32> to vector<8x96xf32>
    %81 = arith.addf %78, %80 : vector<8x96xf32>
    %82 = vector.extract_strided_slice %77 {offsets = [0, 96], sizes = [8, 64], strides = [1, 1]} : vector<8x160xf32> to vector<8x64xf32>
    %83 = vector.extract_strided_slice %81 {offsets = [0, 0], sizes = [8, 32], strides = [1, 1]} : vector<8x96xf32> to vector<8x32xf32>
    %84 = vector.extract_strided_slice %44 {offsets = [0, 0], sizes = [8, 32], strides = [1, 1]} : vector<8x64xf32> to vector<8x32xf32>
    %85 = arith.addf %83, %84 : vector<8x32xf32>
    %86 = arith.negf %85 : vector<8x32xf32>
    %87 = math.exp %86 : vector<8x32xf32>
    %cst_41 = arith.constant 1.000000e+00 : f32
    %88 = vector.broadcast %cst_41 : f32 to vector<8x32xf32>
    %89 = arith.addf %88, %87 : vector<8x32xf32>
    %90 = arith.divf %88, %89 : vector<8x32xf32>
    %91 = vector.extract_strided_slice %81 {offsets = [0, 32], sizes = [8, 32], strides = [1, 1]} : vector<8x96xf32> to vector<8x32xf32>
    %92 = vector.extract_strided_slice %44 {offsets = [0, 32], sizes = [8, 32], strides = [1, 1]} : vector<8x64xf32> to vector<8x32xf32>
    %93 = arith.addf %91, %92 : vector<8x32xf32>
    %94 = arith.negf %93 : vector<8x32xf32>
    %95 = math.exp %94 : vector<8x32xf32>
    %cst_42 = arith.constant 1.000000e+00 : f32
    %96 = vector.broadcast %cst_42 : f32 to vector<8x32xf32>
    %97 = arith.addf %96, %95 : vector<8x32xf32>
    %98 = arith.divf %96, %97 : vector<8x32xf32>
    %99 = vector.extract_strided_slice %81 {offsets = [0, 64], sizes = [8, 32], strides = [1, 1]} : vector<8x96xf32> to vector<8x32xf32>
    %100 = arith.mulf %98, %37 : vector<8x32xf32>
    %c0_43 = arith.constant 0 : index
    %c0_44 = arith.constant 0 : index
    %101 = vector.load %arg16[%c0_43, %c0_44] : memref<32x32xf32, #tpu.memory_space<vmem>>, vector<32x32xf32>
    %cst_45 = arith.constant dense<0.000000e+00> : vector<8x32xf32>
    %102 = tpu.matmul %100, %101, %cst_45 {dimension_numbers = #tpu.dot_dimension_numbers<[1], [0], [0], [1], [0, 0, 1, 1], [], []>} : vector<8x32xf32>, vector<32x32xf32>, vector<8x32xf32> -> vector<8x32xf32>
    %103 = arith.addf %99, %102 : vector<8x32xf32>
    %104 = math.tanh %103 : vector<8x32xf32>
    %105 = arith.subf %104, %37 : vector<8x32xf32>
    %106 = arith.mulf %90, %105 : vector<8x32xf32>
    %107 = arith.addf %37, %106 : vector<8x32xf32>
    %108 = arith.subf %107, %37 : vector<8x32xf32>
    %109 = vector.broadcast %6 : vector<8x1xf32> to vector<8x32xf32>
    %110 = arith.mulf %109, %108 : vector<8x32xf32>
    %111 = arith.addf %37, %110 : vector<8x32xf32>
    %c0_46 = arith.constant 0 : index
    %c0_47 = arith.constant 0 : index
    %112 = vector.load %arg19[%c0_46, %c0_47] : memref<8x32xf32, #tpu.memory_space<vmem>>, vector<8x32xf32>
    tpu.vector_store %arg19[%c0_46, %c0_47], %111 {strides = array<i32>} : memref<8x32xf32, #tpu.memory_space<vmem>>, vector<8x32xf32>,
    %c0_48 = arith.constant 0 : index
    %c0_49 = arith.constant 0 : index
    %113 = vector.load %arg17[%c0_48, %c0_49] : memref<32x128xf32, #tpu.memory_space<vmem>>, vector<32x128xf32>
    %cst_50 = arith.constant dense<0.000000e+00> : vector<8x128xf32>
    %114 = tpu.matmul %111, %113, %cst_50 {dimension_numbers = #tpu.dot_dimension_numbers<[1], [0], [0], [1], [0, 0, 1, 1], [], []>} : vector<8x32xf32>, vector<32x128xf32>, vector<8x128xf32> -> vector<8x128xf32>
    %115 = vector.extract_strided_slice %114 {offsets = [0, 0], sizes = [8, 64], strides = [1, 1]} : vector<8x128xf32> to vector<8x64xf32>
    %c0_51 = arith.constant 0 : index
    %c0_52 = arith.constant 0 : index
    %116 = vector.load %arg20[%c0_51, %c0_52] : memref<8x64xf32, #tpu.memory_space<vmem>>, vector<8x64xf32>
    tpu.vector_store %arg20[%c0_51, %c0_52], %115 {strides = array<i32>} : memref<8x64xf32, #tpu.memory_space<vmem>>, vector<8x64xf32>,
    %117 = vector.extract_strided_slice %114 {offsets = [0, 64], sizes = [8, 64], strides = [1, 1]} : vector<8x128xf32> to vector<8x64xf32>
    %118 = arith.addf %117, %82 : vector<8x64xf32>
    %c0_53 = arith.constant 0 : index
    %c0_54 = arith.constant 0 : index
    %c0_55 = arith.constant 0 : index
    %119 = vector.load %arg2[%c0_53, %c0_54, %c0_55] : memref<1x8x64xf32, #tpu.memory_space<vmem>>, vector<1x8x64xf32>
    %120 = vector.shape_cast %119 : vector<1x8x64xf32> to vector<8x64xf32>
    %121 = arith.addf %118, %120 : vector<8x64xf32>
    %122 = vector.extract_strided_slice %121 {offsets = [0, 0], sizes = [8, 32], strides = [1, 1]} : vector<8x64xf32> to vector<8x32xf32>
    %123 = vector.extract_strided_slice %121 {offsets = [0, 32], sizes = [8, 32], strides = [1, 1]} : vector<8x64xf32> to vector<8x32xf32>
    %124 = arith.maximumf %122, %123 : vector<8x32xf32>
    %125 = vector.broadcast %6 : vector<8x1xf32> to vector<8x32xf32>
    %126 = arith.mulf %124, %125 : vector<8x32xf32>
    %c0_56 = arith.constant 0 : index
    %c0_57 = arith.constant 0 : index
    %c0_58 = arith.constant 0 : index
    %127 = vector.load %arg18[%c0_56, %c0_57, %c0_58] : memref<1x8x32xf32, #tpu.memory_space<vmem>>, vector<1x8x32xf32>
    %128 = vector.shape_cast %127 : vector<1x8x32xf32> to vector<8x32xf32>
    %129 = vector.shape_cast %126 : vector<8x32xf32> to vector<1x8x32xf32>
    tpu.vector_store %arg18[%c0_56, %c0_57, %c0_58], %129 {strides = array<i32>} : memref<1x8x32xf32, #tpu.memory_space<vmem>>, vector<1x8x32xf32>,
    return
  }
  func.func @transform_0(%arg0: i32) -> (i32, i32, i32) {
    %c0_i32 = arith.constant 0 : i32
    %c0_i32_0 = arith.constant 0 : i32
    %c0_i32_1 = arith.constant 0 : i32
    return %arg0, %c0_i32, %c0_i32_0 : i32, i32, i32
  }
  func.func @transform_1(%arg0: i32) -> (i32, i32, i32) {
    %c0_i32 = arith.constant 0 : i32
    %c0_i32_0 = arith.constant 0 : i32
    %c0_i32_1 = arith.constant 0 : i32
    return %arg0, %c0_i32, %c0_i32_0 : i32, i32, i32
  }
  func.func @transform_2(%arg0: i32) -> (i32, i32, i32) {
    %c0_i32 = arith.constant 0 : i32
    %c0_i32_0 = arith.constant 0 : i32
    %c0_i32_1 = arith.constant 0 : i32
    return %arg0, %c0_i32, %c0_i32_0 : i32, i32, i32
  }
  func.func @transform_3(%arg0: i32) -> (i32, i32, i32) {
    %c0_i32 = arith.constant 0 : i32
    %c0_i32_0 = arith.constant 0 : i32
    %c0_i32_1 = arith.constant 0 : i32
    %c0_i32_2 = arith.constant 0 : i32
    return %c0_i32, %c0_i32_0, %c0_i32_1 : i32, i32, i32
  }
  func.func @transform_4(%arg0: i32) -> (i32, i32, i32) {
    %c0_i32 = arith.constant 0 : i32
    %c0_i32_0 = arith.constant 0 : i32
    %c0_i32_1 = arith.constant 0 : i32
    %c0_i32_2 = arith.constant 0 : i32
    return %c0_i32, %c0_i32_0, %c0_i32_1 : i32, i32, i32
  }
  func.func @transform_5(%arg0: i32) -> (i32, i32) {
    %c0_i32 = arith.constant 0 : i32
    %c0_i32_0 = arith.constant 0 : i32
    %c0_i32_1 = arith.constant 0 : i32
    return %c0_i32, %c0_i32_0 : i32, i32
  }
  func.func @transform_6(%arg0: i32) -> (i32, i32) {
    %c0_i32 = arith.constant 0 : i32
    %c0_i32_0 = arith.constant 0 : i32
    %c0_i32_1 = arith.constant 0 : i32
    return %c0_i32, %c0_i32_0 : i32, i32
  }
  func.func @transform_7(%arg0: i32) -> (i32, i32) {
    %c0_i32 = arith.constant 0 : i32
    %c0_i32_0 = arith.constant 0 : i32
    %c0_i32_1 = arith.constant 0 : i32
    return %c0_i32, %c0_i32_0 : i32, i32
  }
  func.func @transform_8(%arg0: i32) -> (i32, i32) {
    %c0_i32 = arith.constant 0 : i32
    %c0_i32_0 = arith.constant 0 : i32
    %c0_i32_1 = arith.constant 0 : i32
    return %c0_i32, %c0_i32_0 : i32, i32
  }
  func.func @transform_9(%arg0: i32) -> (i32, i32) {
    %c0_i32 = arith.constant 0 : i32
    %c0_i32_0 = arith.constant 0 : i32
    %c0_i32_1 = arith.constant 0 : i32
    return %c0_i32, %c0_i32_0 : i32, i32
  }
  func.func @transform_10(%arg0: i32) -> (i32, i32) {
    %c0_i32 = arith.constant 0 : i32
    %c0_i32_0 = arith.constant 0 : i32
    %c0_i32_1 = arith.constant 0 : i32
    return %c0_i32, %c0_i32_0 : i32, i32
  }
  func.func @transform_11(%arg0: i32) -> (i32, i32) {
    %c0_i32 = arith.constant 0 : i32
    %c0_i32_0 = arith.constant 0 : i32
    %c0_i32_1 = arith.constant 0 : i32
    return %c0_i32, %c0_i32_0 : i32, i32
  }
  func.func @transform_12(%arg0: i32) -> (i32, i32) {
    %c0_i32 = arith.constant 0 : i32
    %c0_i32_0 = arith.constant 0 : i32
    %c0_i32_1 = arith.constant 0 : i32
    return %c0_i32, %c0_i32_0 : i32, i32
  }
  func.func @transform_13(%arg0: i32) -> (i32, i32) {
    %c0_i32 = arith.constant 0 : i32
    %c0_i32_0 = arith.constant 0 : i32
    %c0_i32_1 = arith.constant 0 : i32
    return %c0_i32, %c0_i32_0 : i32, i32
  }
  func.func @transform_14(%arg0: i32) -> (i32, i32) {
    %c0_i32 = arith.constant 0 : i32
    %c0_i32_0 = arith.constant 0 : i32
    %c0_i32_1 = arith.constant 0 : i32
    return %c0_i32, %c0_i32_0 : i32, i32
  }
  func.func @transform_15(%arg0: i32) -> (i32, i32) {
    %c0_i32 = arith.constant 0 : i32
    %c0_i32_0 = arith.constant 0 : i32
    %c0_i32_1 = arith.constant 0 : i32
    return %c0_i32, %c0_i32_0 : i32, i32
  }
  func.func @transform_16(%arg0: i32) -> (i32, i32) {
    %c0_i32 = arith.constant 0 : i32
    %c0_i32_0 = arith.constant 0 : i32
    %c0_i32_1 = arith.constant 0 : i32
    return %c0_i32, %c0_i32_0 : i32, i32
  }
  func.func @transform_17(%arg0: i32) -> (i32, i32, i32) {
    %c0_i32 = arith.constant 0 : i32
    %c0_i32_0 = arith.constant 0 : i32
    %c0_i32_1 = arith.constant 0 : i32
    return %arg0, %c0_i32, %c0_i32_0 : i32, i32, i32
  }
}

</mosaic_0001>

<bundles_post_ra>
// kernel: tpu_custom_call.1
= control target key start
LH: loop header
LB: loop body
LE: loop exit
PB: predicated region body
PF: predicated region fallthrough
CT: control target
= control target key end

     0   :  { %s4055_s0 = inlined_call_operand.hbm [shape: f32[6,8,96], index: 0, kind: input, shape index: {}]   ;;  %s4056_s1 = inlined_call_operand.hbm [shape: f32[6,8,64], index: 1, kind: input, shape index: {}]   ;;  %s4057_s2 = inlined_call_operand.vmem [shape: f32[6,8,1], index: 2, kind: input, shape index: {}]   ;;  %s4058_s3 = inlined_call_operand.hbm [shape: f32[8,8,32], index: 3, kind: input, shape index: {}]   ;;  %s4059_s4 = inlined_call_operand.hbm [shape: f32[8,8,32], index: 4, kind: input, shape index: {}]   ;;  %s4060_s5 = inlined_call_operand.vmem [shape: f32[8,8], index: 5, kind: input, shape index: {}]   ;;  %s4061_s6 = inlined_call_operand.hbm [shape: f32[8,32], index: 6, kind: input, shape index: {}]   ;;  %s4062_s7 = inlined_call_operand.hbm [shape: f32[8,64], index: 7, kind: input, shape index: {}]   ;;  %s4063_s8 = inlined_call_operand.hbm [shape: f32[32,32], index: 8, kind: input, shape index: {}]   ;;  %s4064_s9 = inlined_call_operand.hbm [shape: f32[32,96], index: 9, kind: input, shape index: {}]   ;;  %s4065_s10 = inlined_call_operand.vmem [shape: f32[1,32], index: 10, kind: input, shape index: {}]   ;;  %s4066_s11 = inlined_call_operand.vmem [shape: f32[1,32], index: 11, kind: input, shape index: {}]   ;;  %s4067_s12 = inlined_call_operand.<no memory space> [shape: f32[1,1], index: 12, kind: input, shape index: {}]   ;;  %s4068_s13 = inlined_call_operand.vmem [shape: f32[32,160], index: 13, kind: input, shape index: {}]   ;;  %s4069_s14 = inlined_call_operand.vmem [shape: f32[1,96], index: 14, kind: input, shape index: {}]   ;;  %s4070_s15 = inlined_call_operand.hbm [shape: f32[32,32], index: 15, kind: input, shape index: {}]   ;;  %s4071_s16 = inlined_call_operand.hbm [shape: f32[32,128], index: 16, kind: input, shape index: {}]   ;;  %s4072_s17 = inlined_call_operand.hbm [shape: f32[6,8,32], index: 17, kind: output, shape index: {}]  }
   0x1   :  { %4088 = sst [smem:[#allocation35_spill]] %s4055_s0  ;;  %v22_v0 = vstv %s4067_s12 }
   0x2   :  { %4089 = sst [smem:[#allocation36_spill]] %s4056_s1  ;;  %23 = vst [vmem:[#allocation4] sm:$0x1] %v22_v0 }
   0x3   :  { %4090 = sst [smem:[#allocation37_spill]] %s4058_s3 }
   0x4   :  { %4091 = sst [smem:[#allocation38_spill]] %s4059_s4 }
   0x5   :  { %4092 = sst [smem:[#allocation39_spill]] %s4061_s6 }
   0x6   :  { %4093 = sst [smem:[#allocation40_spill]] %s4062_s7 }
   0x7   :  { %4094 = sst [smem:[#allocation41_spill]] %s4063_s8 }
   0x8   :  { %4095 = sst [smem:[#allocation42_spill]] %s4064_s9 }
   0x9   :  { %4096 = sst [smem:[#allocation43_spill]] %s4070_s15 }
   0xa   :  { %4097 = sst [smem:[#allocation44_spill]] %s4071_s16 }
   0xb   :  { %4098 = sst [smem:[#allocation45_spill]] %s4072_s17 }
   0xc   :  { %24 = vsyncpa [#allocation6], 0 }
   0xd   :  { %26 = vsyncpa [#allocation6 + $0x1], 0 }
   0xe   :  { %27 = vsyncpa [#allocation9], 0 }
   0xf   :  { %29 = vsyncpa [#allocation9 + $0x1], 0 }
  0x10   :  { %30 = vsyncpa [#allocation12], 0 }
  0x11   :  { %31 = vsyncpa [#allocation15], 0 }
  0x12   :  { %32 = vsyncpa [#allocation18], 0 }
  0x13   :  { %33 = vsyncpa [#allocation21], 0 }
  0x14   :  { %34 = vsyncpa [#allocation7], 0 }
  0x15   :  { %36 = vsyncpa [#allocation7 + $0x1], 0  ;;  %s3446_s26 = smov 0   ;;  %s3448_s27 = smov 0  }
  0x16   :  { %s3450_s28 = smov 0   ;;  %s3452_s29 = smov 0  }
  0x17 LB: > { %4099 = sst [smem:[#allocation31_spill]] %s3327_s28  ;;  %s3333_s12 = smov [#allocation10]   ;;  %s3331_s29 = sphi %s3452_s29, %s4140_s29   ;;  %s3327_s28 = sphi %s3450_s28, %s4142_s28   ;;  %s3323_s27 = sphi %s3448_s27, %s4144_s27   ;;  %s3319_s26 = sphi %s3446_s26, %s4143_s26  }
  0x18   : > { %s457_s0 = sshll.u32 %s3333_s12, 4  ;;  %s3467_s30 = sadd.s32 4294967295, %s3331_s29   ;;  %s458_s0 = int_to_ptr.vmem [resolvable:$true] %s457_s0 }
  0x19   : > { %p2619_p0 = scmp.ge.s32.totalorder %s3331_s29, 1  ;;  %p4084_p1 = scmp.eq.s32.totalorder %s3467_s30, 0 }
  0x1a   : > { %p445_p2 = scmp.lt.s32.totalorder %s3331_s29, 7  ;;  %s3334_s19 = smov [#allocation11]  }
  0x1b   : > { %s470_s1 = sshll.u32 %s3334_s19, 4  ;;  %s3335_s21 = smov [#allocation14]   ;;  %s3485_s1 = int_to_ptr.vmem [resolvable:$true] %s470_s1 }
  0x1c   : > { %p3473_p4 = pnand %p2619_p0, %p445_p2  ;;  %s498_s22 = sshll.u32 %s3335_s21, 4  ;;  %s3487_s22 = int_to_ptr.vmem [resolvable:$true] %s498_s22 }
  0x1d   : > { %s2990_s24 = scalar_lea.vmem %s458_s0, 1024  ;;  %p2998_p11 = scmp.lt.s32.totalorder %s458_s0, %s458_s0 }
  0x1e   : > { %s4100_s18 = scalar_select %p3473_p4, 1, 0 }
  0x1f   : > { %p2828_p5 = pneg %p3473_p4  ;;  %p2991_p8 = scmp.ne.s32.totalorder %s458_s0, %s2990_s24 }
  0x20   : > { %p2999_p12 = scmp.lt.s32.totalorder %s2990_s24, %s2990_s24 }
  0x21   : > { %p3481_p6 = pnand %p2828_p5, %p4084_p1 }
  0x22   : > { %p3000_p13 = por %p2999_p12, %p2998_p11 }
  0x23   : > { %p3491_p7 = pneg %p3481_p6 }
  0x25   : > { %p2993_p9 = pnand %p2991_p8, %p3491_p7 }
  0x27   : > { %p2994_p10 = pneg %p2993_p9 }
  0x29   : > { %p3001_p0 = pnand %p3000_p13, %p2994_p10 }
  0x2b   : > { %3004 = shalt.err (!%p3001_p0)
}
  0x2c   : > { %s4076_s25 = smov 128   ;;  %s4078_s12 = smov 8  }
  0x2d   : > { %s4103_s3 = sld [smem:[#allocation37_spill]]  ;;  %s3016_s17 = scalar_lea.vmem %s3485_s1, 1024 }
  0x2e   : > { %p3017_p2 = scmp.ne.s32.totalorder %s3485_s1, %s3016_s17  ;;  %p3024_p9 = scmp.lt.s32.totalorder %s3485_s1, %s3485_s1 }
  0x2f   : > { %p3025_p10 = scmp.lt.s32.totalorder %s3016_s17, %s3016_s17 }
  0x30   : > { %p3019_p5 = pnand %p3017_p2, %p3491_p7 }
  0x31   : > { %p3026_p11 = por %p3025_p10, %p3024_p9 }
  0x32   : > { %p3020_p8 = pneg %p3019_p5 }
  0x33   : > { %2831 = dma.hbm_to_vmem [thread:$0]  (!%p3481_p6), %s4103_s3, 1024, %s458_s0, [#allocation9], %s4076_s25, %s4076_s25, %s4078_s12  }
  0x34   : > { %p3027_p12 = pnand %p3026_p11, %p3020_p8 }
  0x36   : > { %3030 = shalt.err (!%p3027_p12)
}
  0x37   : > { %s4104_s4 = sld [smem:[#allocation38_spill]]  ;;  %s3042_s0 = scalar_lea.vmem %s3487_s22, 128 }
  0x38   : > { %p3043_p13 = scmp.ne.s32.totalorder %s3487_s22, %s3042_s0  ;;  %p3050_p5 = scmp.lt.s32.totalorder %s3487_s22, %s3487_s22 }
  0x39   : > { %p3051_p8 = scmp.lt.s32.totalorder %s3042_s0, %s3042_s0 }
  0x3a   : > { %p3045_p0 = pnand %p3043_p13, %p3491_p7 }
  0x3b   : > { %p3052_p9 = por %p3051_p8, %p3050_p5 }
  0x3c   : > { %p3046_p2 = pneg %p3045_p0 }
  0x3d   : > { %2834 = dma.hbm_to_vmem [thread:$0]  (!%p3481_p6), %s4104_s4, 1024, %s3485_s1, [#allocation12], %s4076_s25, %s4076_s25, %s4078_s12  }
  0x3e   : > { %p3053_p10 = pnand %p3052_p9, %p3046_p2 }
  0x40   : > { %3056 = shalt.err (!%p3053_p10)
}
  0x41   : > { %s4105_s7 = sld [smem:[#allocation40_spill]]  ;;  %s3338_s1 = smov [#allocation17]  }
  0x42   : > { %s521_s24 = sshll.u32 %s3338_s1, 4  ;;  %s3339_s19 = smov [#allocation13]   ;;  %s522_s24 = int_to_ptr.vmem [resolvable:$true] %s521_s24 }
  0x43   : > { %s487_s25 = sshll.u32 %s3339_s19, 4  ;;  %s3068_s12 = scalar_lea.vmem %s522_s24, 512  ;;  %s488_s25 = int_to_ptr.vmem [resolvable:$true] %s487_s25 }
  0x44   : > { %p3069_p11 = scmp.ne.s32.totalorder %s522_s24, %s3068_s12  ;;  %p3076_p0 = scmp.lt.s32.totalorder %s522_s24, %s522_s24 }
  0x45   : > { %p3077_p2 = scmp.lt.s32.totalorder %s3068_s12, %s3068_s12 }
  0x46   : > { %p3071_p12 = pnand %p3069_p11, %p3491_p7 }
  0x47   : > { %2840 = dma.hbm_to_vmem [thread:$0]  (!%p3481_p6), %s4105_s7, 128, %s3487_s22, [#allocation15]  }
  0x48   : > { %p3072_p13 = pneg %p3071_p12  ;;  %p3078_p5 = por %p3077_p2, %p3076_p0 }
  0x4a   : > { %p3079_p8 = pnand %p3078_p5, %p3072_p13 }
  0x4c   : > { %3082 = shalt.err (!%p3079_p8)
}
  0x4d   : > { %s4106_s0 = smov 8   ;;  %s4107_s17 = smov 128  }
  0x4e   : > { %s4108_s9 = sld [smem:[#allocation42_spill]]  ;;  %s3094_s1 = scalar_lea.vmem %s488_s25, 128 }
  0x4f   : > { %p3095_p9 = scmp.ne.s32.totalorder %s488_s25, %s3094_s1  ;;  %p3102_p12 = scmp.lt.s32.totalorder %s488_s25, %s488_s25 }
  0x50   : > { %p3103_p0 = scmp.lt.s32.totalorder %s3094_s1, %s3094_s1 }
  0x51   : > { %p3097_p10 = pnand %p3095_p9, %p3491_p7 }
  0x52   : > { %p3104_p13 = por %p3103_p0, %p3102_p12 }
  0x53   : > { %p3098_p11 = pneg %p3097_p10 }
  0x54   : > { %2846 = dma.hbm_to_vmem [thread:$0]  (!%p3481_p6), %s4108_s9, 512, %s522_s24, [#allocation18], %s4107_s17, %s4107_s17, %s4106_s0  }
  0x55   : > { %p3105_p2 = pnand %p3104_p13, %p3098_p11 }
  0x57   : > { %3108 = shalt.err (!%p3105_p2)
}
  0x58   : > { %s4109_s6 = sld [smem:[#allocation39_spill]]  ;;  %s3340_s22 = smov [#allocation16]  }
  0x59   : > { %s508_s24 = sshll.u32 %s3340_s22, 4  ;;  %s3341_s21 = smov [#allocation19]   ;;  %s509_s24 = int_to_ptr.vmem [resolvable:$true] %s508_s24 }
  0x5a   : > { %s549_s3 = sshll.u32 %s3341_s21, 4  ;;  %s3120_s4 = scalar_lea.vmem %s509_s24, 512  ;;  %s550_s3 = int_to_ptr.vmem [resolvable:$true] %s549_s3 }
  0x5b   : > { %p3121_p5 = scmp.ne.s32.totalorder %s509_s24, %s3120_s4  ;;  %p3128_p10 = scmp.lt.s32.totalorder %s509_s24, %s509_s24 }
  0x5c   : > { %p3129_p11 = scmp.lt.s32.totalorder %s3120_s4, %s3120_s4 }
  0x5d   : > { %p3123_p8 = pnand %p3121_p5, %p3491_p7 }
  0x5e   : > { %2837 = dma.hbm_to_vmem [thread:$0]  (!%p3481_p6), %s4109_s6, 128, %s488_s25, [#allocation12]  }
  0x5f   : > { %p3124_p9 = pneg %p3123_p8  ;;  %p3130_p12 = por %p3129_p11, %p3128_p10 }
  0x61   : > { %p3131_p0 = pnand %p3130_p12, %p3124_p9 }
  0x63   : > { %3134 = shalt.err (!%p3131_p0)
}
  0x64   : > { %s4110_s8 = sld [smem:[#allocation41_spill]]  ;;  %s3146_s12 = scalar_lea.vmem %s550_s3, 512 }
  0x65   : > { %p3147_p13 = scmp.ne.s32.totalorder %s550_s3, %s3146_s12  ;;  %p3154_p8 = scmp.lt.s32.totalorder %s550_s3, %s550_s3 }
  0x66   : > { %p3155_p10 = scmp.lt.s32.totalorder %s3146_s12, %s3146_s12 }
  0x67   : > { %p3149_p2 = pnand %p3147_p13, %p3491_p7 }
  0x68   : > { %p3156_p9 = por %p3155_p10, %p3154_p8 }
  0x69   : > { %p3150_p5 = pneg %p3149_p2 }
  0x6a   : > { %2843 = dma.hbm_to_vmem [thread:$0]  (!%p3481_p6), %s4110_s8, 512, %s509_s24, [#allocation15], %s4107_s17, %s4107_s17, %s4106_s0  }
  0x6b   : > { %p3157_p11 = pnand %p3156_p9, %p3150_p5 }
  0x6d   : > { %3160 = shalt.err (!%p3157_p11)
}
  0x6e   : > { %s4111_s15 = sld [smem:[#allocation43_spill]]  ;;  %s3342_s22 = smov [#allocation20]  }
  0x6f   : > { %s562_s24 = sshll.u32 %s3342_s22, 4  ;;  %s563_s24 = int_to_ptr.vmem [resolvable:$true] %s562_s24 }
  0x70   : > { %s3172_s21 = scalar_lea.vmem %s563_s24, 512  ;;  %p3180_p2 = scmp.lt.s32.totalorder %s563_s24, %s563_s24 }
  0x71   : > { %p3173_p12 = scmp.ne.s32.totalorder %s563_s24, %s3172_s21  ;;  %p3181_p5 = scmp.lt.s32.totalorder %s3172_s21, %s3172_s21 }
  0x73   : > { %p3175_p0 = pnand %p3173_p12, %p3491_p7  ;;  %p3182_p8 = por %p3181_p5, %p3180_p2 }
  0x74   : > { %2849 = dma.hbm_to_vmem [thread:$0]  (!%p3481_p6), %s4111_s15, 512, %s550_s3, [#allocation18], %s4107_s17, %s4107_s17, %s4106_s0  }
  0x75   : > { %p3176_p13 = pneg %p3175_p0 }
  0x77   : > { %p3183_p10 = pnand %p3182_p8, %p3176_p13 }
  0x79   : > { %3186 = shalt.err (!%p3183_p10)
}
  0x7a   : > { %s4112_s16 = sld [smem:[#allocation44_spill]]  ;;  %s2618_s20 = sadd.s32 4294967294, %s3331_s29  }
  0x7b   : > { %s3581_s23 = sadd.s32 1, %s3331_s29   ;;  %s49_s12 = sadd.s32 1, %s3327_s28 }
  0x7c   : > { %4113 = sst [smem:[#allocation32_spill]] %s3581_s23  ;;  %s46_s1 = ssub.s32 %s3331_s29, %s3581_s23 }
  0x7d   : > { %p47_p7 = scmp.eq.s32.totalorder %s46_s1, 0  ;;  %p56_p9 = scmp.ne.s32.totalorder %s3327_s28, %s3323_s27 }
  0x7e   : > { %p57_p11 = scmp.eq.s32.totalorder %s3331_s29, 0  ;;  %p62_p12 = scmp.ne.s32.totalorder %s3323_s27, %s3319_s26 }
  0x7f   : > { %s3592_s4 = scalar_select %p47_p7, %s3327_s28, %s49_s12  }
  0x80   : > { %2852 = dma.hbm_to_vmem [thread:$0]  (!%p3481_p6), %s4112_s16, 512, %s563_s24, [#allocation21], %s4107_s17, %s4107_s17, %s4106_s0  }
  0x81   : > { %4114 = sst [smem:[#allocation33_spill]] %s3592_s4  ;;  %p3594_p0 = por %p57_p11, %p56_p9 }
  0x82   : > { %p3600_p6 = por %p4084_p1, %p62_p12  ;;  %p432_p13 = scmp.eq.s32.totalorder %s3467_s30, 5 }
  0x83   : > { %p438_p2 = scmp.eq.s32.totalorder %s2618_s20, 5  ;;  %p2872_p5 = scmp.lt.s32.totalorder %s3331_s29, 6 }
  0x84   : > { %s4116_s0 = scalar_select %p3600_p6, 1, 0 }
  0x85   : > { %s576_s17 = sand.u32 1, %s3327_s28   ;;  %p3607_p8 = por %p432_p13, %p56_p9 }
  0x86   : > { %p3611_p10 = por %p438_p2, %p62_p12  ;;  %s3615_s21 = sshll.u32 %s576_s17, 3 }
  0x87   : > { %s4117_s22 = scalar_select %p3607_p8, 1, 0 }
  0x88   : > { %s4118_s24 = scalar_select %p3611_p10, 1, 0 }
  0x89   : > { %s2630_s25 = sshll.u32 %s3331_s29, 7  ;;  %s4120_s12 = sld [smem:[#allocation35_spill]] }
  0x8a   : > { %4119 = sst [smem:[#allocation34_spill]] %s4118_s24  ;;  %s580_s20 = scalar_lea.vmem [#allocation5], %s3615_s21 }
  0x8b   : > { %s587_s7 = sshll.u32 %s580_s20, 4  ;;  %p3628_p7 = pnand %p2872_p5, %p3594_p0  ;;  %s3624_s7 = int_to_ptr.vmem [resolvable:$true] %s587_s7 }
  0x8c   : > { %s4122_s16 = sld [smem:[#allocation36_spill]]  ;;  %s594_s1 = sand.u32 1, %s3331_s29  }
  0x8d   : > { %s577_s4 = scalar_lea.sflag [#allocation6], %s576_s17  ;;  %p3189_p11 = pneg %p3628_p7 }
  0x8f   : > { %s3621_s6 = scalar_lea.hbm %s4120_s12, %s2630_s25  ;;  %s3192_s23 = scalar_lea.hbm %s4120_s12, 768 }
  0x90   : > { %s3187_s28 = scalar_lea.hbm %s3621_s6, 128  ;;  %p3193_p13 = scmp.lt.s32.totalorder %s3621_s6, %s4120_s12 }
  0x91   : > { %p3188_p9 = scmp.ne.s32.totalorder %s3621_s6, %s3187_s28  ;;  %p3194_p2 = scmp.lt.s32.totalorder %s3192_s23, %s3187_s28 }
  0x92   : > { %s3635_s3 = scalar_lea.hbm %s4122_s16, %s2630_s25 }
  0x93   : > { %p3190_p12 = pnand %p3189_p11, %p3188_p9  ;;  %p3195_p5 = por %p3194_p2, %p3193_p13 }
  0x95   : > { %p3191_p0 = pneg %p3190_p12 }
  0x97   : > { %p3196_p3 = pnand %p3195_p5, %p3191_p0 }
  0x99   : > { %3199 = shalt.err (!%p3196_p3)
}
  0x9a   : > { %s3200_s15 = scalar_lea.vmem %s3624_s7, 128  ;;  %s3343_s17 = smov [#allocation5]  }
  0x9b   : > { %p3201_p1 = scmp.ne.s32.totalorder %s3624_s7, %s3200_s15  ;;  %s3205_s25 = sshll.u32 %s3343_s17, 4  ;;  %s3206_s25 = int_to_ptr.vmem [resolvable:$false] %s3205_s25 }
  0x9c   : > { %s3207_s19 = scalar_lea.vmem %s3206_s25, 256  ;;  %p3208_p10 = scmp.lt.s32.totalorder %s3624_s7, %s3206_s25 }
  0x9d   : > { %p3203_p9 = pnand %p3201_p1, %p3189_p11  ;;  %p3209_p8 = scmp.lt.s32.totalorder %s3207_s19, %s3200_s15 }
  0x9f   : > { %p3204_p12 = pneg %p3203_p9  ;;  %p3210_p6 = por %p3209_p8, %p3208_p10 }
  0xa1   : > { %p3211_p13 = pnand %p3210_p6, %p3204_p12 }
  0xa3   : > { %3214 = shalt.err (!%p3211_p13)
}
  0xa4   : > { %2856 = dma.hbm_to_vmem [thread:$0]  (!%p3628_p7), %s3621_s6, 128, %s3624_s7, %s577_s4  }
  0xa5   : > { %s598_s28 = scalar_lea.vmem [#allocation8], %s3615_s21  ;;  %s595_s24 = scalar_lea.sflag [#allocation9], %s594_s1 }
  0xa6   : > { %s605_s23 = sshll.u32 %s598_s28, 4  ;;  %s3215_s20 = scalar_lea.hbm %s3635_s3, 128  ;;  %s606_s23 = int_to_ptr.vmem [resolvable:$true] %s605_s23 }
  0xa7   : > { %p3216_p1 = scmp.ne.s32.totalorder %s3635_s3, %s3215_s20  ;;  %s3220_s17 = scalar_lea.hbm %s4122_s16, 768 }
  0xa8   : > { %p3221_p8 = scmp.lt.s32.totalorder %s3635_s3, %s4122_s16  ;;  %p3222_p10 = scmp.lt.s32.totalorder %s3220_s17, %s3215_s20 }
  0xa9   : > { %p3218_p3 = pnand %p3216_p1, %p3189_p11 }
  0xaa   : > { %p3223_p0 = por %p3222_p10, %p3221_p8 }
  0xab   : > { %p3219_p6 = pneg %p3218_p3 }
  0xad   : > { %p3224_p2 = pnand %p3223_p0, %p3219_p6 }
  0xaf   : > { %3227 = shalt.err (!%p3224_p2)
}
  0xb0   : > { %s3228_s6 = scalar_lea.vmem %s606_s23, 128  ;;  %s3344_s7 = smov [#allocation8]  }
  0xb1   : > { %p3229_p5 = scmp.ne.s32.totalorder %s606_s23, %s3228_s6  ;;  %s3233_s4 = sshll.u32 %s3344_s7, 4  ;;  %s3234_s4 = int_to_ptr.vmem [resolvable:$false] %s3233_s4 }
  0xb2   : > { %s3235_s21 = scalar_lea.vmem %s3234_s4, 256  ;;  %p3236_p13 = scmp.lt.s32.totalorder %s606_s23, %s3234_s4 }
  0xb3   : > { %p3231_p9 = pnand %p3229_p5, %p3189_p11  ;;  %p3237_p1 = scmp.lt.s32.totalorder %s3235_s21, %s3228_s6 }
  0xb5   : > { %p3232_p12 = pneg %p3231_p9  ;;  %p3238_p3 = por %p3237_p1, %p3236_p13 }
  0xb7   : > { %p3239_p4 = pnand %p3238_p3, %p3232_p12 }
  0xb9   : > { %3242 = shalt.err (!%p3239_p4)
}
  0xba   : > { %2859 = dma.hbm_to_vmem [thread:$0]  (!%p3628_p7), %s3635_s3, 128, %s606_s23, %s595_s24  }
  0xbb   : > { %p4123_p6 = scmp.ne.s32.totalorder %s4100_s18, 0 }
  0xbc   : > { %s3686_s1 = sand.u32 (!%p4123_p6), 1, %s3323_s27   ;;  %p4124_p11 = scmp.ne.s32.totalorder (!%p4123_p6), %s4116_s0, 0 }
  0xbd   : > { %621 = sbr.rel (%p4123_p6) target bundleno = 3349 (0xd15), region = 88  ;;  %s3689_s28 = sshll.u32 (!%p4123_p6), %s3686_s1, 3 }
  0xbe   : > { %s624_s20 = scalar_lea.sflag (!%p4123_p6), [#allocation6], %s3686_s1  ;;  %s627_s9 = scalar_lea.vmem (!%p4123_p6), [#allocation5], %s3689_s28 }
  0xc2   : > { %3286 = dma.done.wait (%p4124_p11), %s624_s20, 128  }
  0xc3   : > { %3288 = vsyncadd (%p4124_p11), %s624_s20, 4294967168  ;;  %s632_s8 = sand.u32 1, %s3467_s30   ;;  %s636_s3 = scalar_lea.vmem [#allocation8], %s3689_s28 }
  0xc4   : > { %s633_s18 = scalar_lea.sflag [#allocation9], %s632_s8 }
  0xc5   : > { %3290 = dma.done.wait (%p4124_p11), %s633_s18, 128  }
  0xc6   : > { %3292 = vsyncadd (%p4124_p11), %s633_s18, 4294967168  ;;  %p4125_p4 = scmp.eq.s32.totalorder %s3467_s30, 0 }
  0xc8   : > { %3294 = dma.done.wait (%p4125_p4), [#allocation9], 1024   ;;  %p4126_p7 = pmov %p4125_p4 }
  0xc9   : > { %p4127_p8 = pmov %p4125_p4 }
  0xca   : > { %3296 = vsyncadd (%p4126_p7), [#allocation9], 4294966272 }
  0xcb   : > { %3298 = dma.done.wait (%p4127_p8), [#allocation12], 1152   ;;  %p4128_p10 = pmov %p4125_p4 }
  0xcc   : > { %p4129_p0 = pmov %p4125_p4 }
  0xcd   : > { %3300 = vsyncadd (%p4128_p10), [#allocation12], 4294966144 }
  0xce   : > { %3302 = dma.done.wait (%p4129_p0), [#allocation15], 640   ;;  %p4130_p2 = pmov %p4129_p0 }
  0xcf   : > { %p4131_p5 = pmov %p4129_p0 }
  0xd0   : > { %3304 = vsyncadd (%p4130_p2), [#allocation15], 4294966656 }
  0xd1   : > { %3306 = dma.done.wait (%p4131_p5), [#allocation18], 1024   ;;  %p4132_p9 = pmov %p4129_p0 }
  0xd2   : > { %p4133_p12 = pmov %p4129_p0 }
  0xd3   : > { %3308 = vsyncadd (%p4132_p9), [#allocation18], 4294966272 }
  0xd4   : > { %3310 = dma.done.wait (%p4133_p12), [#allocation21], 512   ;;  %p4134_p13 = pmov %p4129_p0 }
  0xd5   : > { %p728_p1 = scmp.lt.s32.totalorder %s3467_s30, 5  ;;  %s727_s25 = scalar_lea.vmem [#allocation22], %s3689_s28 }
  0xd6   : > { %3312 = vsyncadd (%p4134_p13), [#allocation21], 4294966784  ;;  %p4135_p3 = scmp.ne.s32.totalorder %s3467_s30, 0 }
  0xd7   : > { %s729_s0 = scalar_select %p728_p1, %s3467_s30, 5 }
  0xd8   : > { %735 = sbr.rel (%p4135_p3) target bundleno = 224 (0xe0), region = 132 }
  0xd9   : > { %s2645_s23 = sshll.u32 %s729_s0, 3 }
  0xda   : > { %s3728_s17 = scalar_lea.vmem %s4057_s2, %s2645_s23 }
  0xdd   : > { %v736_v1 = vld [vmem:[#allocation13] sm:$0xff]  ;;  %vm737_vm0 = vcmask 261120   ;;  %v739_v2 = vld [vmem:[#allocation14] sm:$0xff]  ;;  %vm740_vm1 = vcmask 523264  }
  0xde   : > { %738 = vst.msk [vmem:[#allocation2] sm:$0xff] %vm737_vm0, %v736_v1 }
  0xdf   : > { %741 = vst.msk [vmem:[#allocation3] sm:$0xff] %vm740_vm1, %v739_v2 }
  0xe0 PF: > { %s3345_s19 = smov 32   ;;  %v3346_v4 = vmov 0.0   ;;  %v761_v5 = vld [vmem:[#allocation16 + $0x18] sm:$0xff]  ;;  %v760_v6 = vld [vmem:[#allocation16 + $0x10] sm:$0xff]  ;;  %vm3347_vm2 = vmmov 0   ;;  %v759_v7 = vld [vmem:[#allocation16 + $0x8] sm:$0xff]  ;;  %v952_v41 = vlaneseq }
  0xe1   : > { %2706 = vmatprep.subr.mxu0 %v3346_v4  ;;  %2714 = vmatprep.mubr.msk.f32.mxu0 %vm3347_vm2, %v3346_v4  ;;  %v758_v8 = vld [vmem:[#allocation16] sm:$0xff]  ;;  %v742_v10 = vld [vmem:[%s627_s9] sm:$0xff]  ;;  %s3348_s6 = smov 96   ;;  %vm765_vm3 = vcmask 261120   ;;  %v3349_v19 = vmov 0   ;;  %s3350_s7 = smov 64  }
  0xe2   : > { %2707 = vmatpush3.msra.mxu0 %v761_v5  ;;  %2717 = vmatprep.subr.mxu1 %v3346_v4  ;;  %v743_v22 = vld [vmem:[%s3728_s17] sm:$0xff]  ;;  %v864_v26 = vld [vmem:[#allocation17 + $0x10] sm:$0xff]  ;;  %v863_v27 = vld [vmem:[#allocation17 + $0x8] sm:$0xff]  ;;  %v3351_v39 = vmov 1966171168   ;;  %v3775_v43 = vshrl.u32 %v952_v41, 7 }
  0xe3   : > { %2708 = vmatprep.subr.mxu0 %v3346_v4  ;;  %2725 = vmatprep.mubr.msk.f32.mxu1 %vm3347_vm2, %v3346_v4  ;;  %v865_v25 = vld [vmem:[#allocation17 + $0x18] sm:$0xff]  ;;  %v862_v29 = vld [vmem:[#allocation17] sm:$0xff]  ;;  %v950_v40 = vunpack.c.l.s4 %v3351_v39  ;;  %v997_v59 = vld [vmem:[#allocation10] sm:$0xff]  ;;  %vm1160_vm4 = vcmask 1041409   ;;  %vm1162_vm5 = vcmask 1042434   ;;  %vm1164_vm6 = vcmask 1043459  }
  0xe4   : > { %2709 = vmatpush3.msra.mxu0 %v760_v6  ;;  %2931 = vset.pattern.permute.xlu1 %v3349_v19  ;;  %v2650_v44 = vld [vmem:[%s4065_s10] ss:$0 sm:$0xff]  ;;  %v3785_v51 = vsub.s32 0, %v3775_v43  ;;  %v999_v1 = vld [vmem:[#allocation10 + $0x10] sm:$0xff]  ;;  %v1001_v5 = vld [vmem:[#allocation10 + $0x20] sm:$0xff]  ;;  %vm1166_vm7 = vcmask 1044484  }
  0xe5   : > { %v3733_v3 = vld [vmem:[#allocation2] sm:$0xff]  ;;  %2710 = vmatprep.subr.mxu0 %v3346_v4  ;;  %2932 = vset.pattern.permute.xlu0 %v3349_v19  ;;  %v951_v42 = vunpack.c.0.s8 %v950_v40  ;;  %vm1168_vm8 = vcmask 1045509   ;;  %vm1170_vm9 = vcmask 1046534   ;;  %vm1172_vm10 = vcmask 1047559   ;;  %s2437_s4 = sshll.u32 %s727_s25, 4  ;;  %s4136_s9 = sld [smem:[#allocation45_spill]]  ;;  %s2438_s4 = int_to_ptr.vmem [resolvable:$true] %s2437_s4 }
  0xe6   : > { %754 = vrot.lane.b32.xlu0 %v3733_v3, %s3345_s19  ;;  %2711 = vmatpush3.msra.mxu0 %v759_v7  ;;  %v745_v9 = vld [vmem:[#allocation3] sm:$0xff]  ;;  %v998_v0 = vld [vmem:[#allocation10 + $0x8] sm:$0xff]  ;;  %vm1175_vm11 = vcmask 64512   ;;  %vm2402_vm12 = vcmask 785408   ;;  %vm2394_vm13 = vcmask 523264   ;;  %s3243_s18 = scalar_lea.vmem %s2438_s4, 128 }
  0xe7   : > { %2712 = vmatprep.subr.mxu0 %v3346_v4  ;;  %v746_v11 = vadd.f32 %v745_v9, %v742_v10  ;;  %2718 = vmatpush3.msra.mxu1 %v865_v25  ;;  %v954_v45 = vsub.s32 %v951_v42, %v3775_v43  ;;  %p3244_p6 = scmp.ne.s32.totalorder %s2438_s4, %s3243_s18  ;;  %p4137_p11 = scmp.ne.s32.totalorder %s4117_s22, 0 }
  0xe8   : > { %2713 = vmatpush3.msra.mxu0 %v758_v8  ;;  %2719 = vmatprep.subr.mxu1 %v3346_v4 }
  0xe9   : > { %2738 = vmatprep.subr.mxu0 %v3346_v4  ;;  %v2647_v12 = vmul.f32 -1.442695, %v746_v11  ;;  %2720 = vmatpush3.msra.mxu1 %v864_v26  ;;  %p3245_p4 = pnand %p3244_p6, %p4137_p11 }
  0xea   : > { %2721 = vmatprep.subr.mxu1 %v3346_v4 }
  0xeb   : > { %2933 = vpow2.f32 %v2647_v12  ;;  %2722 = vmatpush3.msra.mxu1 %v863_v27  ;;  %v1003_v12 = vld [vmem:[#allocation10 + $0x30] sm:$0xff]  ;;  %p3246_p7 = pneg %p3245_p4 }
  0xec   : > { %2723 = vmatprep.subr.mxu1 %v3346_v4 }
  0xed   : > { %2724 = vmatpush3.msra.mxu1 %v862_v29 }
  0xee   : > { %2728 = vmatprep.subr.mxu1 %v3346_v4 }
  0xf8   : > { %v2934_v13 = vpop.eup %2933 }
  0xf9   : > { %v750_v14 = vadd.f32 1.0, %v2934_v13 }
  0xfb   : > { %2935 = vrcp.f32 %v750_v14 }
 0x108   : > { %v2936_v15 = vpop.eup %2935 }
 0x158   : > { %v755_v16 = vpop.permute.xlu0 %754 }
 0x159   : > { %v757_v17 = vmul.f32 %v2936_v15, %v755_v16  ;;  %v1002_v16 = vld [vmem:[#allocation10 + $0x28] sm:$0xff] }
 0x15b   : > { %763 = vrot.lane.b32.xlu0 %v757_v17, %s3348_s6 }
 0x1cd   : > { %v764_v18 = vpop.permute.xlu0 %763 }
 0x1ce   : > { %2715 = vmatmul.mubr.msk.f32.vlgmr.msra.gmra.mxu0 %vm765_vm3, %v764_v18 }
 0x1cf   : > { %2740 = vmatprep.mubr.msk.f32.mxu0 %vm3347_vm2, %v3346_v4 }
 0x28e   : > { %v834_v20 = vpop.f32.mrf.mxu0 }
 0x28f   : > { %839 = vrot.lane.b32.xlu1 %v834_v20, %s3350_s7 }
 0x290   : > { %v2716_v21 = vpop.f32.mrf.mxu0 }
 0x293   : > { %844 = vrot.lane.b32.xlu1 %v3733_v3, %s3350_s7 }
 0x297   : > { %857 = vperm.xlu1 %2931, %v743_v22   ;;  %v1004_v22 = vld [vmem:[#allocation10 + $0x38] sm:$0xff] }
 0x301   : > { %v840_v23 = vpop.permute.xlu1 %839 }
 0x302   : > { %v842_v24 = vadd.f32 %v840_v23, %v742_v10 }
 0x304   : > { %2937 = vtanh.f32 %v842_v24  ;;  %v2651_v24 = vld [vmem:[%s4066_s11] ss:$0 sm:$0xff] }
 0x305   : > { %v845_v28 = vpop.permute.xlu1 %844 }
 0x311   : > { %v2938_v30 = vpop.eup %2937 }
 0x312   : > { %v847_v31 = vsub.f32 %v2938_v30, %v845_v28  ;;  %v3763_v35 = vpop.permute.xlu1 %857 }
 0x314   : > { %849 = vrot.lane.b32.xlu0 %v847_v31, %s3350_s7 }
 0x386   : > { %v850_v32 = vpop.permute.xlu0 %849 }
 0x387   : > { %v852_v33 = vmul.f32 %v2936_v15, %v850_v32 }
 0x389   : > { %v853_v34 = vadd.f32 %v852_v33, %v3733_v3 }
 0x38b   : > { %v854_v36 = vsub.f32 %v853_v34, %v3733_v3 }
 0x38d   : > { %v860_v37 = vmul.f32 %v3763_v35, %v854_v36 }
 0x38f   : > { %v3768_v38 = vadd.f32 %v860_v37, %v3733_v3  ;;  %v1000_v3 = vld [vmem:[#allocation10 + $0x18] sm:$0xff] }
 0x391   : > { %2726 = vmatmul.mubr.msk.f32.vlgmr.msra.gmra.mxu1 %vm765_vm3, %v3768_v38 }
 0x392   : > { %2730 = vmatprep.mubr.msk.f32.mxu1 %vm3347_vm2, %v3346_v4 }
 0x451   : > { %v3781_v46 = vpop.f32.mrf.mxu1 }
 0x452   : > { %v946_v47 = vadd.f32 %v2650_v44, %v3781_v46 }
 0x453   : > { %v2727_v48 = vpop.f32.mrf.mxu1 }
 0x454   : > { %v948_v49 = vcombine.high %v946_v47, %v946_v47  ;;  %v955_v50 = vrot.slane %v946_v47, %v954_v45 }
 0x456   : > { %v962_v52 = vrot.slane %v948_v49, %v954_v45  ;;  %v963_v53 = vcombine.high %v955_v50, %v955_v50  ;;  %v971_v54 = vrot.slane %v955_v50, %v954_v45 }
 0x458   : > { %v964_v55 = vcombine.high %v962_v52, %v962_v52  ;;  %v978_v56 = vrot.slane %v962_v52, %v954_v45  ;;  %v985_v57 = vrot.slane %v963_v53, %v954_v45  ;;  %v993_v58 = vcombine.high %v971_v54, %v971_v54 }
 0x459   : > { %v1008_v60 = vrot.slane %v971_v54, %v3785_v51 }
 0x45a   : > { %v992_v61 = vrot.slane %v964_v55, %v954_v45  ;;  %v994_v62 = vcombine.high %v978_v56, %v978_v56  ;;  %v995_v63 = vcombine.high %v985_v57, %v985_v57  ;;  %v1012_v2 = vrot.slane %v985_v57, %v3785_v51  ;;  %v2652_v55 = vld [vmem:[#allocation4] ss:$0 sm:$0xff]  ;;  %v3812_v57 = vld [vmem:[%s4060_s5] sm:$0xff] }
 0x45b   : > { %v1016_v6 = vrot.slane %v993_v58, %v3785_v51  ;;  %v1024_v7 = vrot.slane %v978_v56, %v3785_v51  ;;  %v1045_v8 = vadd.f32 %v1008_v60, %v997_v59  ;;  %v3807_v56 = vsub.s32 1, %v3775_v43 }
 0x45c   : > { %v996_v9 = vcombine.high %v992_v61, %v992_v61  ;;  %v1020_v10 = vrot.slane %v995_v63, %v3785_v51  ;;  %v1032_v11 = vrot.slane %v994_v62, %v3785_v51  ;;  %v1028_v13 = vrot.slane %v992_v61, %v3785_v51 }
 0x45d   : > { %v1046_v14 = vadd.f32 %v1012_v2, %v998_v0  ;;  %v1047_v15 = vadd.f32 %v1016_v6, %v999_v1  ;;  %2939 = vtanh.f32 %v1045_v8  ;;  %v1049_v18 = vadd.f32 %v1024_v7, %v1001_v5 }
 0x45e   : > { %v1048_v17 = vadd.f32 %v1020_v10, %v1000_v3  ;;  %v1051_v19 = vadd.f32 %v1032_v11, %v1003_v12  ;;  %v1036_v20 = vrot.slane %v996_v9, %v3785_v51  ;;  %v1050_v21 = vadd.f32 %v1028_v13, %v1002_v16 }
 0x45f   : > { %2941 = vtanh.f32 %v1046_v14  ;;  %v3815_v58 = vsub.s32 2, %v3775_v43  ;;  %v1256_v59 = vrot.slane %v3812_v57, %v3807_v56  ;;  %v3822_v61 = vsub.s32 3, %v3775_v43 }
 0x460   : > { %2943 = vtanh.f32 %v1047_v15  ;;  %v1052_v23 = vadd.f32 %v1036_v20, %v1004_v22  ;;  %v3827_v63 = vsub.s32 5, %v3775_v43  ;;  %v3832_v1 = vsub.s32 7, %v3775_v43 }
 0x461   : > { %2945 = vtanh.f32 %v1048_v17  ;;  %v1263_v60 = vrot.slane %v3812_v57, %v3815_v58  ;;  %v1270_v62 = vrot.slane %v3812_v57, %v3822_v61  ;;  %v1127_v9 = vand.u32 127, %v952_v41 }
 0x462   : > { %2947 = vtanh.f32 %v1049_v18  ;;  %v1284_v0 = vrot.slane %v3812_v57, %v3827_v63  ;;  %v1298_v2 = vrot.slane %v3812_v57, %v3832_v1 }
 0x463   : > { %2949 = vtanh.f32 %v1051_v19  ;;  %v3838_v12 = vsub.s32 %v1127_v9, %v3775_v43 }
 0x464   : > { %2951 = vtanh.f32 %v1050_v21 }
 0x465   : > { %2953 = vtanh.f32 %v1052_v23 }
 0x46a   : > { %v2940_v25 = vpop.eup %2939 }
 0x46b   : > { %v1068_v26 = vmul.f32 %v2940_v25, %v2651_v24 }
 0x46c   : > { %v2942_v27 = vpop.eup %2941 }
 0x46d   : > { %v2944_v28 = vpop.eup %2943  ;;  %v1076_v29 = vsel %vm765_vm3, %v1068_v26, 0.0  ;;  %v1069_v30 = vmul.f32 %v2942_v27, %v2651_v24 }
 0x46e   : > { %v2946_v31 = vpop.eup %2945  ;;  %1077 = vadd.xlane.f32.xlu0 %v1076_v29  ;;  %v1070_v32 = vmul.f32 %v2944_v28, %v2651_v24 }
 0x46f   : > { %v2948_v33 = vpop.eup %2947  ;;  %v1079_v34 = vsel %vm765_vm3, %v1069_v30, 0.0  ;;  %v1071_v40 = vmul.f32 %v2946_v31, %v2651_v24 }
 0x470   : > { %1080 = vadd.xlane.f32.xlu1 %v1079_v34  ;;  %v1072_v36 = vmul.f32 %v2948_v33, %v2651_v24  ;;  %v2950_v37 = vpop.eup %2949  ;;  %v1082_v39 = vsel %vm765_vm3, %v1070_v32, 0.0 }
 0x471   : > { %v2952_v42 = vpop.eup %2951  ;;  %v1074_v45 = vmul.f32 %v2950_v37, %v2651_v24  ;;  %v1085_v47 = vsel %vm765_vm3, %v1071_v40, 0.0  ;;  %v1249_v40 = vrot.slane %v3812_v57, %v3785_v51 }
 0x472   : > { %1083 = vadd.xlane.f32.xlu0 %v1082_v39  ;;  %v1088_v44 = vsel %vm765_vm3, %v1072_v36, 0.0  ;;  %v1073_v48 = vmul.f32 %v2952_v42, %v2651_v24  ;;  %v2954_v49 = vpop.eup %2953  ;;  %v3859_v42 = vsub.s32 4, %v3775_v43 }
 0x473   : > { %v1094_v50 = vsel %vm765_vm3, %v1074_v45, 0.0  ;;  %v1075_v53 = vmul.f32 %v2954_v49, %v2651_v24  ;;  %v3864_v45 = vsub.s32 6, %v3775_v43 }
 0x474   : > { %1089 = vadd.xlane.f32.xlu1 %v1088_v44  ;;  %v1091_v52 = vsel %vm765_vm3, %v1073_v48, 0.0  ;;  %v1277_v44 = vrot.slane %v3812_v57, %v3859_v42 }
 0x475   : > { %v1097_v54 = vsel %vm765_vm3, %v1075_v53, 0.0 }
 0x476   : > { %1086 = vadd.xlane.f32.xlu0 %v1085_v47  ;;  %v1291_v47 = vrot.slane %v3812_v57, %v3864_v45 }
 0x478   : > { %1095 = vadd.xlane.f32.xlu1 %v1094_v50 }
 0x47a   : > { %1092 = vadd.xlane.f32.xlu0 %v1091_v52 }
 0x47e   : > { %1098 = vadd.xlane.f32.xlu0 %v1097_v54 }
 0x489   : > { %1107 = vperm.xlu1 %2931, %v2652_v55  }
 0x48d   : > { %1258 = vbcast.lane.b32.xlu1 %v1256_v59, 256 }
 0x491   : > { %1265 = vbcast.lane.b32.xlu1 %v1263_v60, 256 }
 0x495   : > { %1272 = vbcast.lane.b32.xlu1 %v1270_v62, 256 }
 0x499   : > { %1286 = vbcast.lane.b32.xlu1 %v1284_v0, 256 }
 0x49d   : > { %1300 = vbcast.lane.b32.xlu1 %v1298_v2, 256 }
 0x4f7   : > { %v1078_v3 = vpop.xlane.xlu0 %1077 }
 0x4f9   : > { %v1081_v5 = vpop.xlane.xlu1 %1080 }
 0x4fb   : > { %v1084_v6 = vpop.xlane.xlu0 %1083 }
 0x4fd   : > { %v1090_v7 = vpop.xlane.xlu1 %1089 }
 0x4ff   : > { %v1087_v8 = vpop.xlane.xlu0 %1086 }
 0x501   : > { %v1096_v10 = vpop.xlane.xlu1 %1095 }
 0x503   : > { %v1093_v11 = vpop.xlane.xlu0 %1092 }
 0x505   : > { %v1108_v13 = vpop.permute.xlu1 %1107 }
 0x506   : > { %v1110_v14 = vadd.f32 %v1108_v13, %v1078_v3  ;;  %v1111_v15 = vadd.f32 %v1108_v13, %v1081_v5  ;;  %v1112_v16 = vadd.f32 %v1108_v13, %v1084_v6  ;;  %v1113_v17 = vadd.f32 %v1108_v13, %v1087_v8 }
 0x507   : > { %v1099_v18 = vpop.xlane.xlu0 %1098  ;;  %v1114_v19 = vadd.f32 %v1108_v13, %v1090_v7  ;;  %v1115_v20 = vadd.f32 %v1108_v13, %v1093_v11  ;;  %v1116_v23 = vadd.f32 %v1108_v13, %v1096_v10 }
 0x508   : > { %v1131_v21 = vrot.slane %v1110_v14, %v3838_v12  ;;  %v1135_v22 = vrot.slane %v1111_v15, %v3838_v12  ;;  %v1139_v41 = vrot.slane %v1112_v16, %v3838_v12  ;;  %v1117_v24 = vadd.f32 %v1108_v13, %v1099_v18 }
 0x509   : > { %v1143_v25 = vrot.slane %v1113_v17, %v3838_v12  ;;  %v1147_v27 = vrot.slane %v1114_v19, %v3838_v12  ;;  %v1151_v29 = vrot.slane %v1115_v20, %v3838_v12  ;;  %v1155_v31 = vrot.slane %v1116_v23, %v3838_v12  ;;  %v1259_v9 = vpop.permute.xlu1 %1258 }
 0x50a   : > { %v1161_v26 = vsel %vm1160_vm4, %v1135_v22, %v1131_v21  ;;  %v1159_v33 = vrot.slane %v1117_v24, %v3838_v12 }
 0x50b   : > { %v1163_v28 = vsel %vm1162_vm5, %v1139_v41, %v1161_v26 }
 0x50c   : > { %v1165_v30 = vsel %vm1164_vm6, %v1143_v25, %v1163_v28 }
 0x50d   : > { %v1167_v32 = vsel %vm1166_vm7, %v1147_v27, %v1165_v30 }
 0x50e   : > { %v1169_v34 = vsel %vm1168_vm8, %v1151_v29, %v1167_v32 }
 0x50f   : > { %v1171_v36 = vsel %vm1170_vm9, %v1155_v31, %v1169_v34 }
 0x510   : > { %v1173_v37 = vsel %vm1172_vm10, %v1159_v33, %v1171_v36 }
 0x511   : > { %v1176_v39 = vsel %vm1175_vm11, %v1173_v37, -inf }
 0x512   : > { %1177 = vmax.xlane.f32.xlu0 %v1176_v39 }
 0x528   : > { %1251 = vbcast.lane.b32.xlu0 %v1249_v40, 256 }
 0x52c   : > { %1279 = vbcast.lane.b32.xlu0 %v1277_v44, 256 }
 0x530   : > { %1293 = vbcast.lane.b32.xlu0 %v1291_v47, 256 }
 0x59b   : > { %v1178_v48 = vpop.xlane.xlu0 %1177 }
 0x59c   : > { %v1187_v49 = vrot.slane %v1178_v48, %v3807_v56  ;;  %v1191_v50 = vrot.slane %v1178_v48, %v3815_v58  ;;  %v1195_v52 = vrot.slane %v1178_v48, %v3822_v61  ;;  %v1183_v53 = vrot.slane %v1178_v48, %v3785_v51 }
 0x59d   : > { %v1199_v54 = vrot.slane %v1178_v48, %v3859_v42  ;;  %v1203_v62 = vrot.slane %v1178_v48, %v3827_v63  ;;  %v1207_v3 = vrot.slane %v1178_v48, %v3864_v45  ;;  %v1211_v8 = vrot.slane %v1178_v48, %v3832_v1 }
 0x59e   : > { %v1221_v55 = vsub.f32 %v1111_v15, %v1187_v49  ;;  %v1222_v59 = vsub.f32 %v1112_v16, %v1191_v50  ;;  %v1220_v43 = vsub.f32 %v1110_v14, %v1183_v53  ;;  %v1223_v60 = vsub.f32 %v1113_v17, %v1195_v52  ;;  %v1266_v16 = vpop.permute.xlu1 %1265 }
 0x59f   : > { %v1224_v2 = vsub.f32 %v1114_v19, %v1199_v54  ;;  %v1225_v7 = vsub.f32 %v1115_v20, %v1203_v62  ;;  %v1226_v11 = vsub.f32 %v1116_v23, %v1207_v3  ;;  %v1227_v14 = vsub.f32 %v1117_v24, %v1211_v8  ;;  %v1252_v18 = vpop.permute.xlu0 %1251 }
 0x5a0   : > { %v1230_v0 = vmul.f32 1.442695, %v1221_v55  ;;  %v1232_v57 = vmul.f32 1.442695, %v1222_v59  ;;  %v1228_v5 = vmul.f32 1.442695, %v1220_v43 }
 0x5a1   : > { %v1234_v6 = vmul.f32 1.442695, %v1223_v60  ;;  %v1236_v10 = vmul.f32 1.442695, %v1224_v2  ;;  %v1238_v13 = vmul.f32 1.442695, %v1225_v7 }
 0x5a2   : > { %2955 = vpow2.f32 %v1230_v0  ;;  %v1240_v15 = vmul.f32 1.442695, %v1226_v11  ;;  %v1242_v17 = vmul.f32 1.442695, %v1227_v14  ;;  %v1273_v21 = vpop.permute.xlu1 %1272 }
 0x5a3   : > { %2957 = vpow2.f32 %v1232_v57  ;;  %v1280_v25 = vpop.permute.xlu0 %1279 }
 0x5a4   : > { %2959 = vpow2.f32 %v1228_v5 }
 0x5a5   : > { %2961 = vpow2.f32 %v1234_v6 }
 0x5a6   : > { %2963 = vpow2.f32 %v1236_v10  ;;  %v1287_v28 = vpop.permute.xlu1 %1286 }
 0x5a7   : > { %2965 = vpow2.f32 %v1238_v13  ;;  %v1294_v33 = vpop.permute.xlu0 %1293 }
 0x5a8   : > { %2967 = vpow2.f32 %v1240_v15 }
 0x5a9   : > { %2969 = vpow2.f32 %v1242_v17  ;;  %v1444_v17 = vld [vmem:[#allocation11] sm:$0xff] }
 0x5aa   : > { %v1301_v37 = vpop.permute.xlu1 %1300  ;;  %2729 = vmatpush3.msra.mxu1 %v1444_v17 }
 0x5ab   : > { %2733 = vmatprep.subr.mxu1 %v3346_v4 }
 0x5af   : > { %v2956_v19 = vpop.eup %2955 }
 0x5b0   : > { %v3876_v20 = vmul.f32 %v2956_v19, %v1259_v9  ;;  %v2958_v22 = vpop.eup %2957 }
 0x5b1   : > { %v2960_v41 = vpop.eup %2959  ;;  %v1312_v24 = vmul.f32 %v2958_v22, %v1266_v16 }
 0x5b2   : > { %1330 = vperm.xlu1 %2931, %v3876_v20   ;;  %v1310_v23 = vmul.f32 %v2960_v41, %v1252_v18  ;;  %v2962_v26 = vpop.eup %2961  ;;  %v1446_v41 = vld [vmem:[#allocation11 + $0x10] sm:$0xff] }
 0x5b3   : > { %v2964_v27 = vpop.eup %2963  ;;  %v1313_v29 = vmul.f32 %v2962_v26, %v1273_v21  ;;  %2739 = vmatpush3.msra.mxu0 %v1446_v41 }
 0x5b4   : > { %1327 = vperm.xlu0 %2932, %v1310_v23   ;;  %v2966_v30 = vpop.eup %2965  ;;  %v1314_v31 = vmul.f32 %v2964_v27, %v1280_v25  ;;  %2748 = vmatprep.subr.mxu0 %v3346_v4 }
 0x5b5   : > { %v2968_v32 = vpop.eup %2967  ;;  %v1315_v34 = vmul.f32 %v2966_v30, %v1287_v28  ;;  %v1445_v30 = vld [vmem:[#allocation11 + $0x8] sm:$0xff] }
 0x5b6   : > { %1333 = vperm.xlu1 %2931, %v1312_v24   ;;  %v2970_v36 = vpop.eup %2969  ;;  %v1316_v39 = vmul.f32 %v2968_v32, %v1294_v33  ;;  %v1448_v32 = vld [vmem:[#allocation11 + $0x20] sm:$0xff] }
 0x5b7   : > { %v1317_v40 = vmul.f32 %v2970_v36, %v1301_v37  ;;  %v1449_v36 = vld [vmem:[#allocation11 + $0x28] sm:$0xff] }
 0x5b8   : > { %1336 = vperm.xlu0 %2932, %v1313_v29  }
 0x5ba   : > { %1339 = vperm.xlu1 %2931, %v1314_v31  }
 0x5bc   : > { %1342 = vperm.xlu0 %2932, %v1315_v34  }
 0x5be   : > { %1345 = vperm.xlu1 %2931, %v1316_v39  }
 0x5c0   : > { %1348 = vperm.xlu0 %2932, %v1317_v40  }
 0x62d   : > { %v1331_v44 = vpop.permute.xlu1 %1330 }
 0x62e   : > { %v1357_v47 = vrot.slane %v1331_v44, %v3838_v12 }
 0x62f   : > { %v1328_v48 = vpop.permute.xlu0 %1327 }
 0x630   : > { %v1353_v49 = vrot.slane %v1328_v48, %v3838_v12  ;;  %v1451_v48 = vld [vmem:[#allocation11 + $0x38] sm:$0xff] }
 0x631   : > { %v1334_v50 = vpop.permute.xlu1 %1333 }
 0x632   : > { %v1361_v52 = vrot.slane %v1334_v50, %v3838_v12  ;;  %v1382_v53 = vsel %vm1160_vm4, %v1357_v47, %v1353_v49 }
 0x633   : > { %v1337_v55 = vpop.permute.xlu0 %1336 }
 0x634   : > { %v1383_v54 = vsel %vm1162_vm5, %v1361_v52, %v1382_v53  ;;  %v1365_v59 = vrot.slane %v1337_v55, %v3838_v12  ;;  %v2098_v55 = vld [vmem:[%s4068_s13 + $0x30] sm:$0xff] }
 0x635   : > { %v1340_v43 = vpop.permute.xlu1 %1339 }
 0x636   : > { %v1369_v60 = vrot.slane %v1340_v43, %v3838_v12  ;;  %v1384_v62 = vsel %vm1164_vm6, %v1365_v59, %v1383_v54  ;;  %v2099_v54 = vld [vmem:[%s4068_s13 + $0x38] sm:$0xff]  ;;  %v2097_v59 = vld [vmem:[%s4068_s13 + $0x28] sm:$0xff] }
 0x637   : > { %v1343_v57 = vpop.permute.xlu0 %1342  ;;  %v2095_v43 = vld [vmem:[%s4068_s13 + $0x18] sm:$0xff] }
 0x638   : > { %v1385_v0 = vsel %vm1166_vm7, %v1369_v60, %v1384_v62  ;;  %v1373_v2 = vrot.slane %v1343_v57, %v3838_v12  ;;  %v2094_v60 = vld [vmem:[%s4068_s13 + $0x10] sm:$0xff]  ;;  %v2093_v62 = vld [vmem:[%s4068_s13 + $0x8] sm:$0xff] }
 0x639   : > { %v1346_v3 = vpop.permute.xlu1 %1345 }
 0x63a   : > { %v1377_v5 = vrot.slane %v1346_v3, %v3838_v12  ;;  %v1386_v6 = vsel %vm1168_vm8, %v1373_v2, %v1385_v0  ;;  %v2092_v0 = vld [vmem:[%s4068_s13] sm:$0xff] }
 0x63b   : > { %v1349_v7 = vpop.permute.xlu0 %1348 }
 0x63c   : > { %v1387_v8 = vsel %vm1170_vm9, %v1377_v5, %v1386_v6  ;;  %v1381_v9 = vrot.slane %v1349_v7, %v3838_v12 }
 0x63e   : > { %v1388_v10 = vsel %vm1172_vm10, %v1381_v9, %v1387_v8 }
 0x63f   : > { %v1390_v11 = vsel %vm1175_vm11, %v1388_v10, 0.0 }
 0x640   : > { %1391 = vadd.xlane.f32.xlu1 %v1390_v11 }
 0x651   : > { %2214 = vrot.lane.b32.xlu1 %v3768_v38, %s3345_s19 }
 0x6c9   : > { %v1392_v13 = vpop.xlane.xlu1 %1391 }
 0x6ca   : > { %v1393_v14 = vadd.f32 1e-20, %v1392_v13 }
 0x6cc   : > { %2971 = vrcp.f32 %v1393_v14 }
 0x6d9   : > { %v2972_v15 = vpop.eup %2971 }
 0x6da   : > { %v1399_v16 = vrot.slane %v2972_v15, %v3785_v51  ;;  %v1403_v19 = vrot.slane %v2972_v15, %v3807_v56  ;;  %v1407_v22 = vrot.slane %v2972_v15, %v3815_v58  ;;  %v1411_v26 = vrot.slane %v2972_v15, %v3822_v61 }
 0x6db   : > { %v1419_v27 = vrot.slane %v2972_v15, %v3827_v63  ;;  %v1423_v58 = vrot.slane %v2972_v15, %v3864_v45 }
 0x6dc   : > { %v1436_v18 = vmul.f32 %v1399_v16, %v1310_v23  ;;  %v1437_v21 = vmul.f32 %v1403_v19, %v3876_v20  ;;  %v1438_v25 = vmul.f32 %v1407_v22, %v1312_v24  ;;  %v1439_v51 = vmul.f32 %v1411_v26, %v1313_v29 }
 0x6dd   : > { %v1415_v23 = vrot.slane %v2972_v15, %v3859_v42  ;;  %v1441_v20 = vmul.f32 %v1419_v27, %v1315_v34  ;;  %v1442_v28 = vmul.f32 %v1423_v58, %v1316_v39  ;;  %v1427_v24 = vrot.slane %v2972_v15, %v3832_v1  ;;  %v1447_v1 = vld [vmem:[#allocation11 + $0x18] sm:$0xff] }
 0x6de   : > { %1454 = vperm.xlu0 %2932, %v1436_v18  }
 0x6df   : > { %v1440_v56 = vmul.f32 %v1415_v23, %v1314_v31  ;;  %v1443_v61 = vmul.f32 %v1427_v24, %v1317_v40  ;;  %v1450_v40 = vld [vmem:[#allocation11 + $0x30] sm:$0xff] }
 0x6e2   : > { %1534 = vperm.xlu0 %2932, %v1437_v21  }
 0x6e6   : > { %1614 = vperm.xlu0 %2932, %v1438_v25  }
 0x6ea   : > { %1694 = vperm.xlu0 %2932, %v1439_v51  }
 0x6ee   : > { %1774 = vperm.xlu0 %2932, %v1440_v56  }
 0x6f2   : > { %1854 = vperm.xlu0 %2932, %v1441_v20  }
 0x6f6   : > { %1934 = vperm.xlu0 %2932, %v1442_v28  }
 0x6fa   : > { %2014 = vperm.xlu0 %2932, %v1443_v61   ;;  %v2221_v61 = vld [vmem:[#allocation19 + $0x18] sm:$0xff] }
 0x6fe   : > { %2204 = vrot.lane.b32.xlu0 %v3781_v46, %s3348_s6 }
 0x759   : > { %v1455_v29 = vpop.permute.xlu0 %1454 }
 0x75a   : > { %v1459_v42 = vrot.slane %v1455_v29, %v3838_v12  ;;  %v2220_v29 = vld [vmem:[#allocation19 + $0x10] sm:$0xff] }
 0x75c   : > { %2731 = vmatmul.mubr.msk.f32.vlgmr.msra.gmra.mxu1 %vm1175_vm11, %v1459_v42  ;;  %v2219_v42 = vld [vmem:[#allocation19 + $0x8] sm:$0xff] }
 0x75d   : > { %v1535_v63 = vpop.permute.xlu0 %1534  ;;  %2734 = vmatpush3.msra.mxu1 %v1445_v30  ;;  %2735 = vmatprep.mubr.msk.f32.mxu1 %vm3347_vm2, %v3346_v4  ;;  %v2218_v30 = vld [vmem:[#allocation19] sm:$0xff] }
 0x75e   : > { %v1539_v45 = vrot.slane %v1535_v63, %v3838_v12  ;;  %2743 = vmatprep.subr.mxu1 %v3346_v4  ;;  %v2662_v63 = vld [vmem:[%s4069_s14] ss:$0 sm:$0xff] }
 0x760   : > { %2736 = vmatmul.mubr.msk.f32.vlgmr.msra.gmra.mxu1 %vm1175_vm11, %v1539_v45 }
 0x761   : > { %v1615_v31 = vpop.permute.xlu0 %1614  ;;  %2744 = vmatpush3.msra.mxu1 %v1447_v1  ;;  %2745 = vmatprep.mubr.msk.f32.mxu1 %vm3347_vm2, %v3346_v4 }
 0x762   : > { %v1619_v46 = vrot.slane %v1615_v31, %v3838_v12  ;;  %2753 = vmatprep.subr.mxu1 %v3346_v4 }
 0x764   : > { %2741 = vmatmul.mubr.msk.f32.vlgmr.msra.gmra.mxu0 %vm1175_vm11, %v1619_v46 }
 0x765   : > { %v1695_v33 = vpop.permute.xlu0 %1694  ;;  %2749 = vmatpush3.msra.mxu0 %v1448_v32  ;;  %2750 = vmatprep.mubr.msk.f32.mxu0 %vm3347_vm2, %v3346_v4 }
 0x766   : > { %v1699_v34 = vrot.slane %v1695_v33, %v3838_v12  ;;  %2758 = vmatprep.subr.mxu0 %v3346_v4 }
 0x768   : > { %2746 = vmatmul.mubr.msk.f32.vlgmr.msra.gmra.mxu1 %vm1175_vm11, %v1699_v34 }
 0x769   : > { %v1775_v37 = vpop.permute.xlu0 %1774  ;;  %2754 = vmatpush3.msra.mxu1 %v1449_v36  ;;  %2755 = vmatprep.mubr.msk.f32.mxu1 %vm3347_vm2, %v3346_v4 }
 0x76a   : > { %v1779_v39 = vrot.slane %v1775_v37, %v3838_v12  ;;  %2763 = vmatprep.subr.mxu1 %v3346_v4  ;;  %v2215_v37 = vpop.permute.xlu1 %2214 }
 0x76c   : > { %2751 = vmatmul.mubr.msk.f32.vlgmr.msra.gmra.mxu0 %vm1175_vm11, %v1779_v39 }
 0x76d   : > { %v1855_v44 = vpop.permute.xlu0 %1854  ;;  %2759 = vmatpush3.msra.mxu0 %v1450_v40  ;;  %2760 = vmatprep.mubr.msk.f32.mxu0 %vm3347_vm2, %v3346_v4 }
 0x76e   : > { %v1859_v47 = vrot.slane %v1855_v44, %v3838_v12  ;;  %2148 = vmatprep.subr.mxu0 %v2099_v54 }
 0x770   : > { %2756 = vmatmul.mubr.msk.f32.vlgmr.msra.gmra.mxu1 %vm1175_vm11, %v1859_v47 }
 0x771   : > { %v1935_v49 = vpop.permute.xlu0 %1934  ;;  %2764 = vmatpush3.msra.mxu1 %v1451_v48  ;;  %2765 = vmatprep.mubr.msk.f32.mxu1 %vm3347_vm2, %v3346_v4 }
 0x772   : > { %v1939_v50 = vrot.slane %v1935_v49, %v3838_v12  ;;  %2768 = vmatprep.subr.mxu1 %v3346_v4 }
 0x774   : > { %2761 = vmatmul.mubr.msk.f32.vlgmr.msra.gmra.mxu0 %vm1175_vm11, %v1939_v50  ;;  %v2320_v50 = vld [vmem:[#allocation20 + $0x18] sm:$0xff] }
 0x775   : > { %v2015_v52 = vpop.permute.xlu0 %2014  ;;  %2188 = vmatprep.mubr.f32.mxu0 %v3346_v4  ;;  %2149 = vmatpush1.msra.mxu0 %v2098_v55  ;;  %v2318_v55 = vld [vmem:[#allocation20 + $0x8] sm:$0xff] }
 0x776   : > { %v2019_v53 = vrot.slane %v2015_v52, %v3838_v12  ;;  %v2096_v12 = vld [vmem:[%s4068_s13 + $0x20] sm:$0xff]  ;;  %2150 = vmatprep.subr.mxu0 %v2097_v59  ;;  %v2319_v52 = vld [vmem:[#allocation20 + $0x10] sm:$0xff] }
 0x777   : > { %2151 = vmatpush1.msra.mxu0 %v2096_v12  ;;  %v2406_v59 = vld [vmem:[%s636_s3] sm:$0xff]  ;;  %s2667_s3 = sshll.u32 %s3467_s30, 7 }
 0x778   : > { %2766 = vmatmul.mubr.msk.f32.vlgmr.msra.gmra.mxu1 %vm1175_vm11, %v2019_v53  ;;  %2152 = vmatprep.subr.mxu0 %v2095_v43  ;;  %v2317_v43 = vld [vmem:[#allocation20] sm:$0xff]  ;;  %s4016_s8 = scalar_lea.hbm %s4136_s9, %s2667_s3 }
 0x779   : > { %2776 = vmatprep.mubr.msk.f32.mxu1 %vm3347_vm2, %v3346_v4  ;;  %2153 = vmatpush1.msra.mxu0 %v2094_v60  ;;  %v2205_v31 = vpop.permute.xlu0 %2204 }
 0x77a   : > { %2154 = vmatprep.subr.mxu0 %v2093_v62  ;;  %2769 = vmatpush3.msra.mxu1 %v2221_v61 }
 0x77b   : > { %2155 = vmatpush1.msra.mxu0 %v2092_v0  ;;  %2770 = vmatprep.subr.mxu1 %v3346_v4 }
 0x77c   : > { %2779 = vmatprep.subr.mxu0 %v3346_v4  ;;  %2771 = vmatpush3.msra.mxu1 %v2220_v29 }
 0x77d   : > { %2772 = vmatprep.subr.mxu1 %v3346_v4 }
 0x77e   : > { %2773 = vmatpush3.msra.mxu1 %v2219_v42 }
 0x77f   : > { %2774 = vmatprep.subr.mxu1 %v3346_v4 }
 0x780   : > { %2775 = vmatpush3.msra.mxu1 %v2218_v30 }
 0x81c   : > { %v1528_v57 = vpop.f32.mrf.mxu1 }
 0x81e   : > { %v2732_v2 = vpop.f32.mrf.mxu1 }
 0x820   : > { %v1608_v3 = vpop.f32.mrf.mxu1 }
 0x821   : > { %v2108_v14 = vrot.slane %v1608_v3, 7 }
 0x822   : > { %v2737_v5 = vpop.f32.mrf.mxu1 }
 0x823   : > { %v2109_v21 = vsel %vm1160_vm4, %v2108_v14, %v1528_v57 }
 0x824   : > { %v1688_v6 = vpop.f32.mrf.mxu0 }
 0x825   : > { %v2110_v15 = vrot.slane %v1688_v6, 6 }
 0x826   : > { %v2742_v7 = vpop.f32.mrf.mxu0 }
 0x827   : > { %v2111_v41 = vsel %vm1162_vm5, %v2110_v15, %v2109_v21 }
 0x828   : > { %v1768_v8 = vpop.f32.mrf.mxu1 }
 0x829   : > { %v2112_v17 = vrot.slane %v1768_v8, 5 }
 0x82a   : > { %v2747_v9 = vpop.f32.mrf.mxu1 }
 0x82b   : > { %v2113_v51 = vsel %vm1164_vm6, %v2112_v17, %v2111_v41 }
 0x82c   : > { %v1848_v10 = vpop.f32.mrf.mxu0 }
 0x82d   : > { %v2114_v18 = vrot.slane %v1848_v10, 4 }
 0x82e   : > { %v2752_v11 = vpop.f32.mrf.mxu0 }
 0x82f   : > { %v2115_v23 = vsel %vm1166_vm7, %v2114_v18, %v2113_v51 }
 0x830   : > { %v1928_v13 = vpop.f32.mrf.mxu1 }
 0x831   : > { %v2116_v22 = vrot.slane %v1928_v13, 3 }
 0x832   : > { %v2757_v16 = vpop.f32.mrf.mxu1 }
 0x833   : > { %v2117_v27 = vsel %vm1168_vm8, %v2116_v22, %v2115_v23 }
 0x834   : > { %v2008_v19 = vpop.f32.mrf.mxu0 }
 0x835   : > { %v2118_v25 = vrot.slane %v2008_v19, 2 }
 0x836   : > { %v2762_v26 = vpop.f32.mrf.mxu0 }
 0x837   : > { %v2119_v58 = vsel %vm1170_vm9, %v2118_v25, %v2117_v27 }
 0x838   : > { %v2088_v56 = vpop.f32.mrf.mxu1 }
 0x839   : > { %v2120_v20 = vrot.slane %v2088_v56, 1 }
 0x83a   : > { %v2767_v28 = vpop.f32.mrf.mxu1 }
 0x83b   : > { %v2121_v24 = vsel %vm1172_vm10, %v2120_v20, %v2119_v58 }
 0x83c   : > { %2661 = vmatmul.mubr.msk.f32.vlgmr.msra.gmra.mxu0 %vm765_vm3, %v2121_v24 }
 0x83d   : > { %2787 = vmatprep.mubr.msk.f32.mxu0 %vm3347_vm2, %v3346_v4  ;;  %2780 = vmatpush3.msra.mxu0 %v2320_v50 }
 0x83e   : > { %2781 = vmatprep.subr.mxu0 %v3346_v4 }
 0x83f   : > { %2782 = vmatpush3.msra.mxu0 %v2319_v52 }
 0x840   : > { %2783 = vmatprep.subr.mxu0 %v3346_v4 }
 0x841   : > { %2784 = vmatpush3.msra.mxu0 %v2318_v55 }
 0x842   : > { %2785 = vmatprep.subr.mxu0 %v3346_v4 }
 0x843   : > { %2786 = vmatpush3.msra.mxu0 %v2317_v43 }
 0x8fc   : > { %v2190_v45 = vpop.f32.mrf.mxu0 }
 0x8fd   : > { %v2202_v1 = vadd.f32 %v2662_v63, %v2190_v45  ;;  %2398 = vrot.lane.b32.xlu1 %v2190_v45, %s3348_s6 }
 0x8fe   : > { %v2192_v60 = vpop.f32.mrf.mxu0 }
 0x8ff   : > { %v2207_v46 = vadd.f32 %v2205_v31, %v2202_v1 }
 0x901   : > { %v2663_v32 = vmul.f32 -1.442695, %v2207_v46  ;;  %2408 = vrot.lane.b32.xlu1 %v2406_v59, %s3350_s7 }
 0x903   : > { %2973 = vpow2.f32 %v2663_v32 }
 0x910   : > { %v2974_v33 = vpop.eup %2973 }
 0x911   : > { %v2211_v34 = vadd.f32 1.0, %v2974_v33 }
 0x913   : > { %2975 = vrcp.f32 %v2211_v34 }
 0x920   : > { %v2976_v36 = vpop.eup %2975 }
 0x921   : > { %v2217_v39 = vmul.f32 %v2976_v36, %v2215_v37 }
 0x923   : > { %2223 = vrot.lane.b32.xlu0 %v2217_v39, %s3348_s6 }
 0x96f   : > { %v2399_v6 = vpop.permute.xlu1 %2398 }
 0x973   : > { %v2409_v9 = vpop.permute.xlu1 %2408 }
 0x995   : > { %v2224_v40 = vpop.permute.xlu0 %2223 }
 0x996   : > { %2777 = vmatmul.mubr.msk.f32.vlgmr.msra.gmra.mxu1 %vm765_vm3, %v2224_v40 }
 0xa56   : > { %v2293_v44 = vpop.f32.mrf.mxu1 }
 0xa57   : > { %2298 = vrot.lane.b32.xlu0 %v2293_v44, %s3350_s7 }
 0xa58   : > { %v2778_v47 = vpop.f32.mrf.mxu1 }
 0xa5b   : > { %2303 = vrot.lane.b32.xlu0 %v3768_v38, %s3350_s7 }
 0xac9   : > { %v2299_v48 = vpop.permute.xlu0 %2298 }
 0xaca   : > { %v2301_v49 = vadd.f32 %v2299_v48, %v2202_v1 }
 0xacc   : > { %2977 = vtanh.f32 %v2301_v49 }
 0xacd   : > { %v2304_v54 = vpop.permute.xlu0 %2303 }
 0xad9   : > { %v2978_v53 = vpop.eup %2977 }
 0xada   : > { %v2306_v12 = vsub.f32 %v2978_v53, %v2304_v54 }
 0xadc   : > { %2308 = vrot.lane.b32.xlu0 %v2306_v12, %s3350_s7 }
 0xae0   : > { %2400 = vrot.lane.b32.xlu0 %v2192_v60, %s3348_s6 }
 0xb4e   : > { %v2309_v62 = vpop.permute.xlu0 %2308 }
 0xb4f   : > { %v2311_v0 = vmul.f32 %v2976_v36, %v2309_v62 }
 0xb51   : > { %v2312_v57 = vadd.f32 %v2311_v0, %v3768_v38 }
 0xb52   : > { %v2401_v4 = vpop.permute.xlu0 %2400 }
 0xb53   : > { %v2313_v2 = vsub.f32 %v2312_v57, %v3768_v38  ;;  %v2403_v7 = vsel %vm2402_vm12, %v2399_v6, %v2401_v4 }
 0xb55   : > { %v2314_v3 = vmul.f32 %v2313_v2, %v3763_v35 }
 0xb57   : > { %v2315_v5 = vadd.f32 %v2314_v3, %v3768_v38 }
 0xb59   : > { %2316 = vst.msk [vmem:[#allocation2] sm:$0xff] %vm765_vm3, %v2315_v5  ;;  %2788 = vmatmul.mubr.msk.f32.vlgmr.msra.gmra.mxu0 %vm765_vm3, %v2315_v5 }
 0xc19   : > { %v2390_v8 = vpop.f32.mrf.mxu0 }
 0xc1a   : > { %2395 = vst.msk [vmem:[#allocation3] sm:$0xff] %vm2394_vm13, %v2390_v8  ;;  %v2405_v10 = vadd.f32 %v2403_v7, %v2390_v8 }
 0xc1b   : > { %v2789_v11 = vpop.f32.mrf.mxu0 }
 0xc1c   : > { %v2411_v38 = vadd.f32 %v2409_v9, %v2405_v10 }
 0xc1e   : > { %2413 = vrot.lane.b32.xlu0 %v2411_v38, %s3348_s6  ;;  %s2424_s6 = scalar_lea.sflag [#allocation7], %s3686_s1 }
 0xc90   : > { %v2414_v13 = vpop.permute.xlu0 %2413 }
 0xc91   : > { %v2416_v14 = vmax.f32 %v2411_v38, %v2414_v13 }
 0xc93   : > { %v2417_v15 = vmul.f32 %v2416_v14, %v3763_v35 }
 0xc95   : > { %2419 = vrot.lane.b32.xlu1 %v2417_v15, %s3350_s7  ;;  %s3352_s7 = smov [#allocation22]  }
 0xc96   : > { %s3247_s30 = sshll.u32 %s3352_s7, 4  ;;  %s3248_s30 = int_to_ptr.vmem [resolvable:$false] %s3247_s30 }
 0xc97   : > { %s3249_s0 = scalar_lea.vmem %s3248_s30, 256  ;;  %p3250_p8 = scmp.lt.s32.totalorder %s2438_s4, %s3248_s30 }
 0xc98   : > { %p3251_p10 = scmp.lt.s32.totalorder %s3249_s0, %s3243_s18 }
 0xc9a   : > { %p3252_p0 = por %p3251_p10, %p3250_p8 }
 0xc9c   : > { %p3253_p2 = pnand %p3252_p0, %p3246_p7 }
 0xd07   : > { %v2420_v16 = vpop.permute.xlu1 %2419 }
 0xd08   : > { %2422 = vst.msk [vmem:[%s727_s25] sm:$0xff] %vm765_vm3, %v2420_v16 }
 0xd09   : > { %3256 = shalt.err (!%p3253_p2)
}
 0xd0a   : > { %s3257_s28 = scalar_lea.hbm %s4016_s8, 128  ;;  %s3261_s23 = scalar_lea.hbm %s4136_s9, 768 }
 0xd0b   : > { %p3258_p5 = scmp.ne.s32.totalorder %s4016_s8, %s3257_s28  ;;  %p3262_p13 = scmp.lt.s32.totalorder %s4016_s8, %s4136_s9 }
 0xd0c   : > { %p3263_p1 = scmp.lt.s32.totalorder %s3261_s23, %s3257_s28 }
 0xd0d   : > { %p3259_p9 = pnand %p3258_p5, %p4137_p11 }
 0xd0e   : > { %p3264_p3 = por %p3263_p1, %p3262_p13 }
 0xd0f   : > { %p3260_p12 = pneg %p3259_p9 }
 0xd11   : > { %p3265_p6 = pnand %p3264_p3, %p3260_p12 }
 0xd13   : > { %3268 = shalt.err (!%p3265_p6)
}
 0xd14   : > { %2826 = dma.vmem_to_hbm [thread:$0]  (%p4137_p11), %s2438_s4, 128, %s4016_s8, %s2424_s6  }
 0xd15 PF: > { %s4138_s17 = sld [smem:[#allocation34_spill]]  ;;  %p2881_p4 = scmp.ge.s32.totalorder %s3331_s29, 2 }
 0xd16   : > { %s2449_s19 = sand.u32 1, %s3319_s26  }
 0xd17   : > { %s2450_s3 = scalar_lea.sflag [#allocation7], %s2449_s19 }
 0xd1b   : > { %p4139_p7 = scmp.ne.s32.totalorder %s4138_s17, 0 }
 0xd1d   : > { %p2861_p8 = pnand %p2881_p4, %p4139_p7 }
 0xd1f   : > { %p2862_p10 = pneg %p2861_p8 }
 0xd21   : > { %3314 = dma.done.wait (%p2862_p10), %s2450_s3, 128  }
 0xd22   : > { %3316 = vsyncadd (%p2862_p10), %s2450_s3, 4294967168  ;;  %s4140_s29 = sld [smem:[#allocation32_spill]]  ;;  %s4143_s26 = smov %s3323_s27 }
 0xd23   : > { %s4141_s21 = sld [smem:[#allocation31_spill]] }
 0xd24   : > { %s4142_s28 = sld [smem:[#allocation33_spill]] }
 0xd28   : > { %p39_p0 = scmp.ge.s32.totalorder %s4140_s29, 8  }
 0xd29   : > { %s4144_s27 = smov %s4141_s21 }
 0xd2a   :  { %41 = sbr.rel (!%p39_p0) target bundleno = 23 (0x17), region = 185 }
 0xd2f   :  { %2455 = vsyncpa [#allocation6], 1 }
 0xd30   :  { %2457 = vsyncpa [#allocation6 + $0x1], 1 }
 0xd31   :  { %2458 = vsyncpa [#allocation9], 1 }
 0xd32   :  { %2460 = vsyncpa [#allocation9 + $0x1], 1 }
 0xd33   :  { %2461 = vsyncpa [#allocation12], 1 }
 0xd34   :  { %2462 = vsyncpa [#allocation15], 1 }
 0xd35   :  { %2463 = vsyncpa [#allocation18], 1 }
 0xd36   :  { %2464 = vsyncpa [#allocation21], 1 }
 0xd37   :  { %2465 = vsyncpa [#allocation7], 1 }
 0xd38   :  { %2467 = vsyncpa [#allocation7 + $0x1], 1 }

</bundles_post_ra>
